<compile_context>
chip_gen: v7x
topology: tpu7x:2x2x1
jax: 0.10.0
libtpu: 0.0.40
codegen_flags: <defaults>
</compile_context>

<pallas_src>
import math

import jax
import jax.numpy as jnp
from jax import lax
from jax.experimental import pallas as pl
from jax.experimental.pallas import tpu as pltpu


# ---------------------------------------------------------------------------
# Fused whole-model kernel.
#
# Packed gate column layout (width 8H), G = 2H per gate, order [i, f, o, g]:
#   within each gate's 2H block: [0:H) = forward direction, [H:2H) = backward.
# State h, c have width 2H laid out [fwd(H) | bwd(H)] (PyTorch bidirectional order).
#
# y_scr stores, at row block t, the step-t hidden S[t] = [h_fwd(time t) | h_bwd(time T-1-t)].
# For every layer, host-side weights WA/WB are masked so that
#   merged_gates[t] = Z[t] @ WA + Z[T-1-t] @ WB + bias
# is exactly the input projection each fused step needs (fwd cols at time t, bwd cols
# at time T-1-t) -- no in-kernel select, no in-kernel reversal reads on the serial path.
# ---------------------------------------------------------------------------
def _make_model_kernel(*, num_layers, T, BP, H):
    G = 2 * H          # per-gate width (both directions)
    GW = 8 * H         # full gate slab width
    SG = 3 * G         # sigmoid slab: i | f | o (contiguous thanks to repacking)

    def kernel(*refs):
        nw = 4 * num_layers
        x_ref = refs[0]                       # (T*BP, D0P) bf16
        w_refs = refs[1:1 + nw]               # per layer: WA, WB, whh, bias
        wcls_ref = refs[1 + nw]               # (2H, O) bf16
        bcls_ref = refs[2 + nw]               # (1, O) f32
        out_ref = refs[3 + nw]                # (BP, O) f32
        gx_scr, gb_scr, y_scr = refs[4 + nw:]  # VMEM scratch

        zeros_state = jnp.zeros((BP, 2 * H), jnp.float32)
        pooled_sum = zeros_state

        for layer in range(num_layers):
            wa_ref = w_refs[4 * layer + 0]
            wb_ref = w_refs[4 * layer + 1]
            whh_ref = w_refs[4 * layer + 2]
            b_ref = w_refs[4 * layer + 3]
            is_last = layer == num_layers - 1

            # ---- Phase 1a: batched input projections for the whole sequence ----
            # Two M = T*BP matmuls (off the serial path, fully pipelined).
            if layer == 0:
                z = x_ref[...]                                   # already bf16
            else:
                z = y_scr[...].astype(jnp.bfloat16)              # prev-layer hiddens
            gx_scr[...] = jnp.dot(z, wa_ref[...], preferred_element_type=jnp.float32)
            gb_scr[...] = jnp.dot(z, wb_ref[...], preferred_element_type=jnp.float32)

            # ---- Phase 1b: pairwise merge (in place, parallel work) -------------
            # merged[t] = A[t] + B[T-1-t] + bias  (bias broadcast hoisted once).
            bias_blk = jnp.broadcast_to(b_ref[...], (BP, GW))
            for t in range(T // 2):
                u = T - 1 - t
                rt, ru = t * BP, u * BP
                a_t = gx_scr[rt:rt + BP, :]
                a_u = gx_scr[ru:ru + BP, :]
                b_t = gb_scr[rt:rt + BP, :]
                b_u = gb_scr[ru:ru + BP, :]
                gx_scr[rt:rt + BP, :] = a_t + b_u + bias_blk
                gx_scr[ru:ru + BP, :] = a_u + b_t + bias_blk
            if T % 2 == 1:
                rm = (T // 2) * BP
                gx_scr[rm:rm + BP, :] = (gx_scr[rm:rm + BP, :]
                                         + gb_scr[rm:rm + BP, :] + bias_blk)

            whh = whh_ref[...]                                   # (2H, 8H) bf16, block-diag

            # ---- Phase 2: serial recurrence, both directions per step -----------
            # One gate load, one bf16 MXU push, sigmoid(i|f|o), tanh(g), tanh(c).
            def cell(t, h, c, _whh=whh):
                r = pl.multiple_of(t * BP, BP)
                gates = gx_scr[pl.ds(r, BP), :] + jnp.dot(
                    h.astype(jnp.bfloat16), _whh,
                    preferred_element_type=jnp.float32)
                sg = jax.nn.sigmoid(gates[:, 0:SG])
                g_g = jnp.tanh(gates[:, SG:GW])
                c = sg[:, G:2 * G] * c + sg[:, 0:G] * g_g
                h = sg[:, 2 * G:3 * G] * jnp.tanh(c)
                return h, c

            if is_last:
                def step(t, carry):
                    h, c, s = carry
                    h, c = cell(t, h, c)
                    return (h, c, s + h)       # GAP fusion: order-independent sum
                _, _, pooled_sum = lax.fori_loop(
                    0, T, step, (zeros_state, zeros_state, zeros_state),
                    unroll=True)
            else:
                def step(t, carry):
                    h, c = carry
                    h, c = cell(t, h, c)
                    r = pl.multiple_of(t * BP, BP)
                    y_scr[pl.ds(r, BP), :] = h  # ONE full-width hidden store
                    return (h, c)
                _ = lax.fori_loop(0, T, step, (zeros_state, zeros_state),
                                  unroll=True)

        # ---- Phase 3: GAP (mean over time) + Linear classifier --------------------
        pooled = pooled_sum * jnp.float32(1.0 / T)                # (BP, 2H) f32
        out_ref[...] = (jnp.dot(pooled.astype(jnp.bfloat16), wcls_ref[...],
                                preferred_element_type=jnp.float32)
                        + bcls_ref[...])

    return kernel


# ---------------------------------------------------------------------------
# Parameter construction (PyTorch-style uniform init, PyTorch [i,f,g,o] layout)
# and packing into the fused layout the kernel expects.
# ---------------------------------------------------------------------------
def init_params(key, input_size, hidden_size, num_layers, output_size):
    H = hidden_size
    bound = 1.0 / math.sqrt(H)
    layers = []
    for layer in range(num_layers):
        d_in = input_size if layer == 0 else 2 * H
        dirs = {}
        for direction in ("fwd", "bwd"):
            key, k1, k2, k3, k4 = jax.random.split(key, 5)
            w_ih = jax.random.uniform(k1, (4 * H, d_in), jnp.float32, -bound, bound)
            w_hh = jax.random.uniform(k2, (4 * H, H), jnp.float32, -bound, bound)
            b_ih = jax.random.uniform(k3, (4 * H,), jnp.float32, -bound, bound)
            b_hh = jax.random.uniform(k4, (4 * H,), jnp.float32, -bound, bound)
            dirs[direction] = (w_ih, w_hh, b_ih, b_hh)
        layers.append(dirs)
    key, k1, k2 = jax.random.split(key, 3)
    cls_bound = 1.0 / math.sqrt(2 * H)
    cls_w = jax.random.uniform(k1, (output_size, 2 * H), jnp.float32, -cls_bound, cls_bound)
    cls_b = jax.random.uniform(k2, (output_size,), jnp.float32, -cls_bound, cls_bound)
    return {"lstm": layers, "cls_w": cls_w, "cls_b": cls_b, "hidden_size": H}


_GATE_ORDER = (0, 1, 3, 2)   # PyTorch [i, f, g, o]  ->  packed [i, f, o, g]


def _interleave_gates(a_fwd, a_bwd, H, order=_GATE_ORDER):
    """Interleave two (..., 4H) blocks into (..., 8H): [g0_f, g0_b, g1_f, g1_b, ...]."""
    parts = []
    for k in order:
        parts.append(a_fwd[..., k * H:(k + 1) * H])
        parts.append(a_bwd[..., k * H:(k + 1) * H])
    return jnp.concatenate(parts, axis=-1)


def pack_params(raw):
    H = raw["hidden_size"]
    col_fwd = (((jnp.arange(8 * H) // H) % 2) == 0)[None, :]   # fwd gate columns
    packed_layers = []
    for li, dirs in enumerate(raw["lstm"]):
        w_ih_f, w_hh_f, b_ih_f, b_hh_f = dirs["fwd"]
        w_ih_b, w_hh_b, b_ih_b, b_hh_b = dirs["bwd"]
        wih = _interleave_gates(w_ih_f.T, w_ih_b.T, H)           # (d_in, 8H)
        if li == 0:
            d_in = wih.shape[0]
            pad = (-d_in) % 8                                    # 9 -> 16: tile-aligned
            wih = jnp.pad(wih, ((0, pad), (0, 0)))
            # layer-0 input is stored at its natural time index:
            wa = jnp.where(col_fwd, wih, 0.0)                    # same-time (fwd cols)
            wb = jnp.where(col_fwd, 0.0, wih)                    # reversed-time (bwd cols)
        else:
            # layer input is S[t] = [y_fwd[t] | y_bwd[T-1-t]]
            wtop, wbot = wih[:H, :], wih[H:, :]
            wa = jnp.concatenate([jnp.where(col_fwd, wtop, 0.0),
                                  jnp.where(col_fwd, 0.0, wbot)], axis=0)
            wb = jnp.concatenate([jnp.where(col_fwd, 0.0, wtop),
                                  jnp.where(col_fwd, wbot, 0.0)], axis=0)
        top = _interleave_gates(w_hh_f.T, jnp.zeros_like(w_hh_b.T), H)
        bot = _interleave_gates(jnp.zeros_like(w_hh_f.T), w_hh_b.T, H)
        whh = jnp.concatenate([top, bot], axis=0)                # (2H, 8H) block-diag
        bias = _interleave_gates((b_ih_f + b_hh_f)[None, :],
                                 (b_ih_b + b_hh_b)[None, :], H)  # (1, 8H)
        packed_layers.append((wa.astype(jnp.bfloat16),
                              wb.astype(jnp.bfloat16),
                              whh.astype(jnp.bfloat16),
                              bias.astype(jnp.float32)))
    return {"layers": packed_layers,
            "cls_w_t": raw["cls_w"].T.astype(jnp.bfloat16),      # (2H, O)
            "cls_b": raw["cls_b"][None, :].astype(jnp.float32)}  # (1, O)


# ---------------------------------------------------------------------------
# Forward pass mirroring LSTMmodel.forward (single fused pallas_call).
# ---------------------------------------------------------------------------
def lstm_model_forward(packed, x, tp=None, mask=None, cat_mask=False, cat_tp=False):
    if cat_mask:
        x = jnp.concatenate([x, mask], axis=-1)
    if cat_tp:
        x = jnp.concatenate([x, tp], axis=-1)
    x = x.astype(jnp.float32)

    B, T, D = x.shape
    BP = ((B + 7) // 8) * 8                        # pad batch to 8 sublanes (free)
    layers = packed["layers"]
    num_layers = len(layers)
    D0P = layers[0][0].shape[0]                    # padded layer-0 feature dim
    H = layers[0][2].shape[0] // 2                 # whh is (2H, 8H)
    O = packed["cls_w_t"].shape[1]

    x_t = jnp.transpose(x, (1, 0, 2))              # (T, B, D) time-major
    x_p = jnp.pad(x_t, ((0, 0), (0, BP - B), (0, D0P - D)))
    x2d = x_p.reshape(T * BP, D0P).astype(jnp.bfloat16)

    flat_w = []
    for (wa, wb, whh, b) in layers:
        flat_w += [wa, wb, whh, b]

    kernel = _make_model_kernel(num_layers=num_layers, T=T, BP=BP, H=H)
    out = pl.pallas_call(
        kernel,
        out_shape=jax.ShapeDtypeStruct((BP, O), jnp.float32),
        in_specs=[pl.BlockSpec(memory_space=pltpu.MemorySpace.VMEM)] * (3 + len(flat_w)),
        out_specs=pl.BlockSpec(memory_space=pltpu.MemorySpace.VMEM),
        scratch_shapes=[
            pltpu.VMEM((T * BP, 8 * H), jnp.float32),   # merged gate pre-activations
            pltpu.VMEM((T * BP, 8 * H), jnp.float32),   # reversed-time contribution
            pltpu.VMEM((T * BP, 2 * H), jnp.float32),   # inter-layer hidden sequence
        ],
    )(x2d, *flat_w, packed["cls_w_t"], packed["cls_b"])
    return out[:B]


# ---------------------------------------------------------------------------
# Pure-JAX references.
#   * reference_forward_matched: mirrors the kernel's precision policy
#     (bf16 matmul operands, f32 accumulate, f32 elementwise) — tight check.
#   * reference_forward: full f32, Precision.HIGHEST — loose sanity check.
# ---------------------------------------------------------------------------
def _lstm_reference(raw, x, tp, mask, cat_mask, cat_tp, dot_fn):
    H = raw["hidden_size"]
    if cat_mask:
        x = jnp.concatenate([x, mask], axis=-1)
    if cat_tp:
        x = jnp.concatenate([x, tp], axis=-1)
    seq = jnp.transpose(x, (1, 0, 2)).astype(jnp.float32)
    T, B, _ = seq.shape

    def run_dir(w_ih, w_hh, bias, xs):
        def cell(carry, x_t):
            h, c = carry
            gates = dot_fn(x_t, w_ih.T) + dot_fn(h, w_hh.T) + bias
            i = jax.nn.sigmoid(gates[:, 0 * H:1 * H])
            f = jax.nn.sigmoid(gates[:, 1 * H:2 * H])
            g = jnp.tanh(gates[:, 2 * H:3 * H])
            o = jax.nn.sigmoid(gates[:, 3 * H:4 * H])
            c = f * c + i * g
            h = o * jnp.tanh(c)
            return (h, c), h
        init = (jnp.zeros((B, H), jnp.float32), jnp.zeros((B, H), jnp.float32))
        _, ys = lax.scan(cell, init, xs)
        return ys

    for dirs in raw["lstm"]:
        w_ih_f, w_hh_f, b_ih_f, b_hh_f = dirs["fwd"]
        w_ih_b, w_hh_b, b_ih_b, b_hh_b = dirs["bwd"]
        yf = run_dir(w_ih_f, w_hh_f, b_ih_f + b_hh_f, seq)
        yb = run_dir(w_ih_b, w_hh_b, b_ih_b + b_hh_b, seq[::-1])[::-1]
        seq = jnp.concatenate([yf, yb], axis=-1)
    pooled = jnp.mean(seq, axis=0)
    return dot_fn(pooled, raw["cls_w"].T) + raw["cls_b"]


def reference_forward_matched(raw, x, tp=None, mask=None, cat_mask=False, cat_tp=False):
    def bdot(a, w):
        return jnp.dot(a.astype(jnp.bfloat16), w.astype(jnp.bfloat16),
                       preferred_element_type=jnp.float32)
    return _lstm_reference(raw, x, tp, mask, cat_mask, cat_tp, bdot)


def reference_forward(raw, x, tp=None, mask=None, cat_mask=False, cat_tp=False):
    def hdot(a, w):
        return jnp.dot(a, w, precision=lax.Precision.HIGHEST)
    return _lstm_reference(raw, x, tp, mask, cat_mask, cat_tp, hdot)


if __name__ == "__main__":
    # opt: input_size=4, hidden_size=32, num_layers=2, output_size=5,
    #      cat_mask=True, cat_tp=True  -> LSTM input size = 4*2 + 1 = 9
    B, T = 2, 8
    input_size, hidden_size, num_layers, output_size = 4, 32, 2, 5
    cat_mask, cat_tp = True, True

    lstm_in = input_size * 2 if cat_mask else input_size
    if cat_tp:
        lstm_in += 1

    key = jax.random.PRNGKey(0)
    kx, km, kt, kp = jax.random.split(key, 4)
    x = jax.random.normal(kx, (B, T, input_size), jnp.float32)
    mask = (jax.random.uniform(km, (B, T, input_size)) > 0.5).astype(jnp.float32)
    tp = jax.random.normal(kt, (B, T, 1), jnp.float32)

    raw = init_params(kp, lstm_in, hidden_size, num_layers, output_size)
    packed = pack_params(raw)

    forward = jax.jit(lstm_model_forward, static_argnames=("cat_mask", "cat_tp"))
    y = forward(packed, x, tp=tp, mask=mask, cat_mask=cat_mask, cat_tp=cat_tp)
    y = jax.block_until_ready(y)
    assert y.shape == (B, output_size), y.shape
    assert bool(jnp.all(jnp.isfinite(y)))

    # Tight check vs a precision-matched reference (catches packing/reversal/merge bugs).
    y_m = reference_forward_matched(raw, x, tp=tp, mask=mask,
                                    cat_mask=cat_mask, cat_tp=cat_tp)
    err_m = float(jnp.max(jnp.abs(y - y_m)))
    assert err_m < 5e-3, f"mismatch vs precision-matched reference: {err_m}"

    # Loose sanity check vs full-f32 Precision.HIGHEST reference (bf16-weight trade-off).
    y_ref = reference_forward(raw, x, tp=tp, mask=mask,
                              cat_mask=cat_mask, cat_tp=cat_tp)
    err = float(jnp.max(jnp.abs(y - y_ref)))
    assert err < 5e-2, f"mismatch vs f32 HIGHEST reference: {err}"

    print("KERNEL_OK")
</pallas_src>

<mosaic_0001>
module attributes {stable_mosaic.version = 11 : i64} {
  func.func @kernel(%arg0: memref<64x16xbf16, #tpu.memory_space<vmem>>, %arg1: memref<16x256xbf16, #tpu.memory_space<vmem>>, %arg2: memref<16x256xbf16, #tpu.memory_space<vmem>>, %arg3: memref<64x256xbf16, #tpu.memory_space<vmem>>, %arg4: memref<1x256xf32, #tpu.memory_space<vmem>>, %arg5: memref<64x256xbf16, #tpu.memory_space<vmem>>, %arg6: memref<64x256xbf16, #tpu.memory_space<vmem>>, %arg7: memref<64x256xbf16, #tpu.memory_space<vmem>>, %arg8: memref<1x256xf32, #tpu.memory_space<vmem>>, %arg9: memref<64x5xbf16, #tpu.memory_space<vmem>>, %arg10: memref<1x5xf32, #tpu.memory_space<vmem>>, %arg11: memref<8x5xf32, #tpu.memory_space<vmem>>, %arg12: memref<64x256xf32, #tpu.memory_space<vmem>>, %arg13: memref<64x256xf32, #tpu.memory_space<vmem>>, %arg14: memref<64x64xf32, #tpu.memory_space<vmem>>) attributes {dimension_semantics = [], scalar_prefetch = 0 : i64, scratch_operands = 3 : i64, tpu.core_type = #tpu.core_type<tc>} {
    %cst = arith.constant 0.000000e+00 : f32
    %0 = vector.broadcast %cst : f32 to vector<8x64xf32>
    %c0 = arith.constant 0 : index
    %c0_0 = arith.constant 0 : index
    %1 = vector.load %arg0[%c0, %c0_0] : memref<64x16xbf16, #tpu.memory_space<vmem>>, vector<64x16xbf16>
    %c0_1 = arith.constant 0 : index
    %c0_2 = arith.constant 0 : index
    %2 = vector.load %arg1[%c0_1, %c0_2] : memref<16x256xbf16, #tpu.memory_space<vmem>>, vector<16x256xbf16>
    %cst_3 = arith.constant dense<0.000000e+00> : vector<64x256xf32>
    %3 = tpu.matmul %1, %2, %cst_3 {dimension_numbers = #tpu.dot_dimension_numbers<[1], [0], [0], [1], [0, 0, 1, 1], [], []>} : vector<64x16xbf16>, vector<16x256xbf16>, vector<64x256xf32> -> vector<64x256xf32>
    %c0_4 = arith.constant 0 : index
    %c0_5 = arith.constant 0 : index
    %4 = vector.load %arg12[%c0_4, %c0_5] : memref<64x256xf32, #tpu.memory_space<vmem>>, vector<64x256xf32>
    tpu.vector_store %arg12[%c0_4, %c0_5], %3 {strides = array<i32>} : memref<64x256xf32, #tpu.memory_space<vmem>>, vector<64x256xf32>,
    %c0_6 = arith.constant 0 : index
    %c0_7 = arith.constant 0 : index
    %5 = vector.load %arg2[%c0_6, %c0_7] : memref<16x256xbf16, #tpu.memory_space<vmem>>, vector<16x256xbf16>
    %cst_8 = arith.constant dense<0.000000e+00> : vector<64x256xf32>
    %6 = tpu.matmul %1, %5, %cst_8 {dimension_numbers = #tpu.dot_dimension_numbers<[1], [0], [0], [1], [0, 0, 1, 1], [], []>} : vector<64x16xbf16>, vector<16x256xbf16>, vector<64x256xf32> -> vector<64x256xf32>
    %c0_9 = arith.constant 0 : index
    %c0_10 = arith.constant 0 : index
    %7 = vector.load %arg13[%c0_9, %c0_10] : memref<64x256xf32, #tpu.memory_space<vmem>>, vector<64x256xf32>
    tpu.vector_store %arg13[%c0_9, %c0_10], %6 {strides = array<i32>} : memref<64x256xf32, #tpu.memory_space<vmem>>, vector<64x256xf32>,
    %c0_11 = arith.constant 0 : index
    %c0_12 = arith.constant 0 : index
    %8 = vector.load %arg4[%c0_11, %c0_12] : memref<1x256xf32, #tpu.memory_space<vmem>>, vector<1x256xf32>
    %9 = vector.shape_cast %8 : vector<1x256xf32> to vector<1x256xf32>
    %10 = vector.broadcast %9 : vector<1x256xf32> to vector<8x256xf32>
    %c0_13 = arith.constant 0 : index
    %c0_14 = arith.constant 0 : index
    %11 = vector.load %arg12[%c0_13, %c0_14] : memref<64x256xf32, #tpu.memory_space<vmem>>, vector<8x256xf32>
    %c56 = arith.constant 56 : index
    %c0_15 = arith.constant 0 : index
    %12 = vector.load %arg12[%c56, %c0_15] : memref<64x256xf32, #tpu.memory_space<vmem>>, vector<8x256xf32>
    %c0_16 = arith.constant 0 : index
    %c0_17 = arith.constant 0 : index
    %13 = vector.load %arg13[%c0_16, %c0_17] : memref<64x256xf32, #tpu.memory_space<vmem>>, vector<8x256xf32>
    %c56_18 = arith.constant 56 : index
    %c0_19 = arith.constant 0 : index
    %14 = vector.load %arg13[%c56_18, %c0_19] : memref<64x256xf32, #tpu.memory_space<vmem>>, vector<8x256xf32>
    %15 = arith.addf %11, %14 : vector<8x256xf32>
    %16 = arith.addf %15, %10 : vector<8x256xf32>
    %c0_20 = arith.constant 0 : index
    %c0_21 = arith.constant 0 : index
    %17 = vector.load %arg12[%c0_20, %c0_21] : memref<64x256xf32, #tpu.memory_space<vmem>>, vector<8x256xf32>
    tpu.vector_store %arg12[%c0_20, %c0_21], %16 {strides = array<i32>} : memref<64x256xf32, #tpu.memory_space<vmem>>, vector<8x256xf32>,
    %18 = arith.addf %12, %13 : vector<8x256xf32>
    %19 = arith.addf %18, %10 : vector<8x256xf32>
    %c56_22 = arith.constant 56 : index
    %c0_23 = arith.constant 0 : index
    %20 = vector.load %arg12[%c56_22, %c0_23] : memref<64x256xf32, #tpu.memory_space<vmem>>, vector<8x256xf32>
    tpu.vector_store %arg12[%c56_22, %c0_23], %19 {strides = array<i32>} : memref<64x256xf32, #tpu.memory_space<vmem>>, vector<8x256xf32>,
    %c8 = arith.constant 8 : index
    %c0_24 = arith.constant 0 : index
    %21 = vector.load %arg12[%c8, %c0_24] : memref<64x256xf32, #tpu.memory_space<vmem>>, vector<8x256xf32>
    %c48 = arith.constant 48 : index
    %c0_25 = arith.constant 0 : index
    %22 = vector.load %arg12[%c48, %c0_25] : memref<64x256xf32, #tpu.memory_space<vmem>>, vector<8x256xf32>
    %c8_26 = arith.constant 8 : index
    %c0_27 = arith.constant 0 : index
    %23 = vector.load %arg13[%c8_26, %c0_27] : memref<64x256xf32, #tpu.memory_space<vmem>>, vector<8x256xf32>
    %c48_28 = arith.constant 48 : index
    %c0_29 = arith.constant 0 : index
    %24 = vector.load %arg13[%c48_28, %c0_29] : memref<64x256xf32, #tpu.memory_space<vmem>>, vector<8x256xf32>
    %25 = arith.addf %21, %24 : vector<8x256xf32>
    %26 = arith.addf %25, %10 : vector<8x256xf32>
    %c8_30 = arith.constant 8 : index
    %c0_31 = arith.constant 0 : index
    %27 = vector.load %arg12[%c8_30, %c0_31] : memref<64x256xf32, #tpu.memory_space<vmem>>, vector<8x256xf32>
    tpu.vector_store %arg12[%c8_30, %c0_31], %26 {strides = array<i32>} : memref<64x256xf32, #tpu.memory_space<vmem>>, vector<8x256xf32>,
    %28 = arith.addf %22, %23 : vector<8x256xf32>
    %29 = arith.addf %28, %10 : vector<8x256xf32>
    %c48_32 = arith.constant 48 : index
    %c0_33 = arith.constant 0 : index
    %30 = vector.load %arg12[%c48_32, %c0_33] : memref<64x256xf32, #tpu.memory_space<vmem>>, vector<8x256xf32>
    tpu.vector_store %arg12[%c48_32, %c0_33], %29 {strides = array<i32>} : memref<64x256xf32, #tpu.memory_space<vmem>>, vector<8x256xf32>,
    %c16 = arith.constant 16 : index
    %c0_34 = arith.constant 0 : index
    %31 = vector.load %arg12[%c16, %c0_34] : memref<64x256xf32, #tpu.memory_space<vmem>>, vector<8x256xf32>
    %c40 = arith.constant 40 : index
    %c0_35 = arith.constant 0 : index
    %32 = vector.load %arg12[%c40, %c0_35] : memref<64x256xf32, #tpu.memory_space<vmem>>, vector<8x256xf32>
    %c16_36 = arith.constant 16 : index
    %c0_37 = arith.constant 0 : index
    %33 = vector.load %arg13[%c16_36, %c0_37] : memref<64x256xf32, #tpu.memory_space<vmem>>, vector<8x256xf32>
    %c40_38 = arith.constant 40 : index
    %c0_39 = arith.constant 0 : index
    %34 = vector.load %arg13[%c40_38, %c0_39] : memref<64x256xf32, #tpu.memory_space<vmem>>, vector<8x256xf32>
    %35 = arith.addf %31, %34 : vector<8x256xf32>
    %36 = arith.addf %35, %10 : vector<8x256xf32>
    %c16_40 = arith.constant 16 : index
    %c0_41 = arith.constant 0 : index
    %37 = vector.load %arg12[%c16_40, %c0_41] : memref<64x256xf32, #tpu.memory_space<vmem>>, vector<8x256xf32>
    tpu.vector_store %arg12[%c16_40, %c0_41], %36 {strides = array<i32>} : memref<64x256xf32, #tpu.memory_space<vmem>>, vector<8x256xf32>,
    %38 = arith.addf %32, %33 : vector<8x256xf32>
    %39 = arith.addf %38, %10 : vector<8x256xf32>
    %c40_42 = arith.constant 40 : index
    %c0_43 = arith.constant 0 : index
    %40 = vector.load %arg12[%c40_42, %c0_43] : memref<64x256xf32, #tpu.memory_space<vmem>>, vector<8x256xf32>
    tpu.vector_store %arg12[%c40_42, %c0_43], %39 {strides = array<i32>} : memref<64x256xf32, #tpu.memory_space<vmem>>, vector<8x256xf32>,
    %c24 = arith.constant 24 : index
    %c0_44 = arith.constant 0 : index
    %41 = vector.load %arg12[%c24, %c0_44] : memref<64x256xf32, #tpu.memory_space<vmem>>, vector<8x256xf32>
    %c32 = arith.constant 32 : index
    %c0_45 = arith.constant 0 : index
    %42 = vector.load %arg12[%c32, %c0_45] : memref<64x256xf32, #tpu.memory_space<vmem>>, vector<8x256xf32>
    %c24_46 = arith.constant 24 : index
    %c0_47 = arith.constant 0 : index
    %43 = vector.load %arg13[%c24_46, %c0_47] : memref<64x256xf32, #tpu.memory_space<vmem>>, vector<8x256xf32>
    %c32_48 = arith.constant 32 : index
    %c0_49 = arith.constant 0 : index
    %44 = vector.load %arg13[%c32_48, %c0_49] : memref<64x256xf32, #tpu.memory_space<vmem>>, vector<8x256xf32>
    %45 = arith.addf %41, %44 : vector<8x256xf32>
    %46 = arith.addf %45, %10 : vector<8x256xf32>
    %c24_50 = arith.constant 24 : index
    %c0_51 = arith.constant 0 : index
    %47 = vector.load %arg12[%c24_50, %c0_51] : memref<64x256xf32, #tpu.memory_space<vmem>>, vector<8x256xf32>
    tpu.vector_store %arg12[%c24_50, %c0_51], %46 {strides = array<i32>} : memref<64x256xf32, #tpu.memory_space<vmem>>, vector<8x256xf32>,
    %48 = arith.addf %42, %43 : vector<8x256xf32>
    %49 = arith.addf %48, %10 : vector<8x256xf32>
    %c32_52 = arith.constant 32 : index
    %c0_53 = arith.constant 0 : index
    %50 = vector.load %arg12[%c32_52, %c0_53] : memref<64x256xf32, #tpu.memory_space<vmem>>, vector<8x256xf32>
    tpu.vector_store %arg12[%c32_52, %c0_53], %49 {strides = array<i32>} : memref<64x256xf32, #tpu.memory_space<vmem>>, vector<8x256xf32>,
    %c0_54 = arith.constant 0 : index
    %c0_55 = arith.constant 0 : index
    %51 = vector.load %arg3[%c0_54, %c0_55] : memref<64x256xbf16, #tpu.memory_space<vmem>>, vector<64x256xbf16>
    %c0_i32 = arith.constant 0 : i32
    %c8_i32 = arith.constant 8 : i32
    %52 = arith.muli %c0_i32, %c8_i32 : i32
    %53 = tpu.assume_multiple %52, 8 : i32
    %54 = arith.index_cast %53 : i32 to index
    %c0_56 = arith.constant 0 : index
    %55 = vector.load %arg12[%54, %c0_56] : memref<64x256xf32, #tpu.memory_space<vmem>>, vector<8x256xf32>
    %56 = arith.truncf %0 : vector<8x64xf32> to vector<8x64xbf16>
    %cst_57 = arith.constant dense<0.000000e+00> : vector<8x256xf32>
    %57 = tpu.matmul %56, %51, %cst_57 {dimension_numbers = #tpu.dot_dimension_numbers<[1], [0], [0], [1], [0, 0, 1, 1], [], []>} : vector<8x64xbf16>, vector<64x256xbf16>, vector<8x256xf32> -> vector<8x256xf32>
    %58 = arith.addf %55, %57 : vector<8x256xf32>
    %59 = vector.extract_strided_slice %58 {offsets = [0, 0], sizes = [8, 192], strides = [1, 1]} : vector<8x256xf32> to vector<8x192xf32>
    %60 = arith.negf %59 : vector<8x192xf32>
    %61 = math.exp %60 : vector<8x192xf32>
    %cst_58 = arith.constant 1.000000e+00 : f32
    %62 = vector.broadcast %cst_58 : f32 to vector<8x192xf32>
    %63 = arith.addf %62, %61 : vector<8x192xf32>
    %64 = arith.divf %62, %63 : vector<8x192xf32>
    %65 = vector.extract_strided_slice %58 {offsets = [0, 192], sizes = [8, 64], strides = [1, 1]} : vector<8x256xf32> to vector<8x64xf32>
    %66 = math.tanh %65 : vector<8x64xf32>
    %67 = vector.extract_strided_slice %64 {offsets = [0, 64], sizes = [8, 64], strides = [1, 1]} : vector<8x192xf32> to vector<8x64xf32>
    %68 = arith.mulf %67, %0 : vector<8x64xf32>
    %69 = vector.extract_strided_slice %64 {offsets = [0, 0], sizes = [8, 64], strides = [1, 1]} : vector<8x192xf32> to vector<8x64xf32>
    %70 = arith.mulf %69, %66 : vector<8x64xf32>
    %71 = arith.addf %68, %70 : vector<8x64xf32>
    %72 = vector.extract_strided_slice %64 {offsets = [0, 128], sizes = [8, 64], strides = [1, 1]} : vector<8x192xf32> to vector<8x64xf32>
    %73 = math.tanh %71 : vector<8x64xf32>
    %74 = arith.mulf %72, %73 : vector<8x64xf32>
    %c8_i32_59 = arith.constant 8 : i32
    %75 = arith.muli %c0_i32, %c8_i32_59 : i32
    %76 = tpu.assume_multiple %75, 8 : i32
    %77 = arith.index_cast %76 : i32 to index
    %c0_60 = arith.constant 0 : index
    %78 = vector.load %arg14[%77, %c0_60] : memref<64x64xf32, #tpu.memory_space<vmem>>, vector<8x64xf32>
    tpu.vector_store %arg14[%77, %c0_60], %74 {strides = array<i32>} : memref<64x64xf32, #tpu.memory_space<vmem>>, vector<8x64xf32>,
    %c1_i32 = arith.constant 1 : i32
    %c8_i32_61 = arith.constant 8 : i32
    %79 = arith.muli %c1_i32, %c8_i32_61 : i32
    %80 = tpu.assume_multiple %79, 8 : i32
    %81 = arith.index_cast %80 : i32 to index
    %c0_62 = arith.constant 0 : index
    %82 = vector.load %arg12[%81, %c0_62] : memref<64x256xf32, #tpu.memory_space<vmem>>, vector<8x256xf32>
    %83 = arith.truncf %74 : vector<8x64xf32> to vector<8x64xbf16>
    %cst_63 = arith.constant dense<0.000000e+00> : vector<8x256xf32>
    %84 = tpu.matmul %83, %51, %cst_63 {dimension_numbers = #tpu.dot_dimension_numbers<[1], [0], [0], [1], [0, 0, 1, 1], [], []>} : vector<8x64xbf16>, vector<64x256xbf16>, vector<8x256xf32> -> vector<8x256xf32>
    %85 = arith.addf %82, %84 : vector<8x256xf32>
    %86 = vector.extract_strided_slice %85 {offsets = [0, 0], sizes = [8, 192], strides = [1, 1]} : vector<8x256xf32> to vector<8x192xf32>
    %87 = arith.negf %86 : vector<8x192xf32>
    %88 = math.exp %87 : vector<8x192xf32>
    %cst_64 = arith.constant 1.000000e+00 : f32
    %89 = vector.broadcast %cst_64 : f32 to vector<8x192xf32>
    %90 = arith.addf %89, %88 : vector<8x192xf32>
    %91 = arith.divf %89, %90 : vector<8x192xf32>
    %92 = vector.extract_strided_slice %85 {offsets = [0, 192], sizes = [8, 64], strides = [1, 1]} : vector<8x256xf32> to vector<8x64xf32>
    %93 = math.tanh %92 : vector<8x64xf32>
    %94 = vector.extract_strided_slice %91 {offsets = [0, 64], sizes = [8, 64], strides = [1, 1]} : vector<8x192xf32> to vector<8x64xf32>
    %95 = arith.mulf %94, %71 : vector<8x64xf32>
    %96 = vector.extract_strided_slice %91 {offsets = [0, 0], sizes = [8, 64], strides = [1, 1]} : vector<8x192xf32> to vector<8x64xf32>
    %97 = arith.mulf %96, %93 : vector<8x64xf32>
    %98 = arith.addf %95, %97 : vector<8x64xf32>
    %99 = vector.extract_strided_slice %91 {offsets = [0, 128], sizes = [8, 64], strides = [1, 1]} : vector<8x192xf32> to vector<8x64xf32>
    %100 = math.tanh %98 : vector<8x64xf32>
    %101 = arith.mulf %99, %100 : vector<8x64xf32>
    %c8_i32_65 = arith.constant 8 : i32
    %102 = arith.muli %c1_i32, %c8_i32_65 : i32
    %103 = tpu.assume_multiple %102, 8 : i32
    %104 = arith.index_cast %103 : i32 to index
    %c0_66 = arith.constant 0 : index
    %105 = vector.load %arg14[%104, %c0_66] : memref<64x64xf32, #tpu.memory_space<vmem>>, vector<8x64xf32>
    tpu.vector_store %arg14[%104, %c0_66], %101 {strides = array<i32>} : memref<64x64xf32, #tpu.memory_space<vmem>>, vector<8x64xf32>,
    %c2_i32 = arith.constant 2 : i32
    %c8_i32_67 = arith.constant 8 : i32
    %106 = arith.muli %c2_i32, %c8_i32_67 : i32
    %107 = tpu.assume_multiple %106, 8 : i32
    %108 = arith.index_cast %107 : i32 to index
    %c0_68 = arith.constant 0 : index
    %109 = vector.load %arg12[%108, %c0_68] : memref<64x256xf32, #tpu.memory_space<vmem>>, vector<8x256xf32>
    %110 = arith.truncf %101 : vector<8x64xf32> to vector<8x64xbf16>
    %cst_69 = arith.constant dense<0.000000e+00> : vector<8x256xf32>
    %111 = tpu.matmul %110, %51, %cst_69 {dimension_numbers = #tpu.dot_dimension_numbers<[1], [0], [0], [1], [0, 0, 1, 1], [], []>} : vector<8x64xbf16>, vector<64x256xbf16>, vector<8x256xf32> -> vector<8x256xf32>
    %112 = arith.addf %109, %111 : vector<8x256xf32>
    %113 = vector.extract_strided_slice %112 {offsets = [0, 0], sizes = [8, 192], strides = [1, 1]} : vector<8x256xf32> to vector<8x192xf32>
    %114 = arith.negf %113 : vector<8x192xf32>
    %115 = math.exp %114 : vector<8x192xf32>
    %cst_70 = arith.constant 1.000000e+00 : f32
    %116 = vector.broadcast %cst_70 : f32 to vector<8x192xf32>
    %117 = arith.addf %116, %115 : vector<8x192xf32>
    %118 = arith.divf %116, %117 : vector<8x192xf32>
    %119 = vector.extract_strided_slice %112 {offsets = [0, 192], sizes = [8, 64], strides = [1, 1]} : vector<8x256xf32> to vector<8x64xf32>
    %120 = math.tanh %119 : vector<8x64xf32>
    %121 = vector.extract_strided_slice %118 {offsets = [0, 64], sizes = [8, 64], strides = [1, 1]} : vector<8x192xf32> to vector<8x64xf32>
    %122 = arith.mulf %121, %98 : vector<8x64xf32>
    %123 = vector.extract_strided_slice %118 {offsets = [0, 0], sizes = [8, 64], strides = [1, 1]} : vector<8x192xf32> to vector<8x64xf32>
    %124 = arith.mulf %123, %120 : vector<8x64xf32>
    %125 = arith.addf %122, %124 : vector<8x64xf32>
    %126 = vector.extract_strided_slice %118 {offsets = [0, 128], sizes = [8, 64], strides = [1, 1]} : vector<8x192xf32> to vector<8x64xf32>
    %127 = math.tanh %125 : vector<8x64xf32>
    %128 = arith.mulf %126, %127 : vector<8x64xf32>
    %c8_i32_71 = arith.constant 8 : i32
    %129 = arith.muli %c2_i32, %c8_i32_71 : i32
    %130 = tpu.assume_multiple %129, 8 : i32
    %131 = arith.index_cast %130 : i32 to index
    %c0_72 = arith.constant 0 : index
    %132 = vector.load %arg14[%131, %c0_72] : memref<64x64xf32, #tpu.memory_space<vmem>>, vector<8x64xf32>
    tpu.vector_store %arg14[%131, %c0_72], %128 {strides = array<i32>} : memref<64x64xf32, #tpu.memory_space<vmem>>, vector<8x64xf32>,
    %c3_i32 = arith.constant 3 : i32
    %c8_i32_73 = arith.constant 8 : i32
    %133 = arith.muli %c3_i32, %c8_i32_73 : i32
    %134 = tpu.assume_multiple %133, 8 : i32
    %135 = arith.index_cast %134 : i32 to index
    %c0_74 = arith.constant 0 : index
    %136 = vector.load %arg12[%135, %c0_74] : memref<64x256xf32, #tpu.memory_space<vmem>>, vector<8x256xf32>
    %137 = arith.truncf %128 : vector<8x64xf32> to vector<8x64xbf16>
    %cst_75 = arith.constant dense<0.000000e+00> : vector<8x256xf32>
    %138 = tpu.matmul %137, %51, %cst_75 {dimension_numbers = #tpu.dot_dimension_numbers<[1], [0], [0], [1], [0, 0, 1, 1], [], []>} : vector<8x64xbf16>, vector<64x256xbf16>, vector<8x256xf32> -> vector<8x256xf32>
    %139 = arith.addf %136, %138 : vector<8x256xf32>
    %140 = vector.extract_strided_slice %139 {offsets = [0, 0], sizes = [8, 192], strides = [1, 1]} : vector<8x256xf32> to vector<8x192xf32>
    %141 = arith.negf %140 : vector<8x192xf32>
    %142 = math.exp %141 : vector<8x192xf32>
    %cst_76 = arith.constant 1.000000e+00 : f32
    %143 = vector.broadcast %cst_76 : f32 to vector<8x192xf32>
    %144 = arith.addf %143, %142 : vector<8x192xf32>
    %145 = arith.divf %143, %144 : vector<8x192xf32>
    %146 = vector.extract_strided_slice %139 {offsets = [0, 192], sizes = [8, 64], strides = [1, 1]} : vector<8x256xf32> to vector<8x64xf32>
    %147 = math.tanh %146 : vector<8x64xf32>
    %148 = vector.extract_strided_slice %145 {offsets = [0, 64], sizes = [8, 64], strides = [1, 1]} : vector<8x192xf32> to vector<8x64xf32>
    %149 = arith.mulf %148, %125 : vector<8x64xf32>
    %150 = vector.extract_strided_slice %145 {offsets = [0, 0], sizes = [8, 64], strides = [1, 1]} : vector<8x192xf32> to vector<8x64xf32>
    %151 = arith.mulf %150, %147 : vector<8x64xf32>
    %152 = arith.addf %149, %151 : vector<8x64xf32>
    %153 = vector.extract_strided_slice %145 {offsets = [0, 128], sizes = [8, 64], strides = [1, 1]} : vector<8x192xf32> to vector<8x64xf32>
    %154 = math.tanh %152 : vector<8x64xf32>
    %155 = arith.mulf %153, %154 : vector<8x64xf32>
    %c8_i32_77 = arith.constant 8 : i32
    %156 = arith.muli %c3_i32, %c8_i32_77 : i32
    %157 = tpu.assume_multiple %156, 8 : i32
    %158 = arith.index_cast %157 : i32 to index
    %c0_78 = arith.constant 0 : index
    %159 = vector.load %arg14[%158, %c0_78] : memref<64x64xf32, #tpu.memory_space<vmem>>, vector<8x64xf32>
    tpu.vector_store %arg14[%158, %c0_78], %155 {strides = array<i32>} : memref<64x64xf32, #tpu.memory_space<vmem>>, vector<8x64xf32>,
    %c4_i32 = arith.constant 4 : i32
    %c8_i32_79 = arith.constant 8 : i32
    %160 = arith.muli %c4_i32, %c8_i32_79 : i32
    %161 = tpu.assume_multiple %160, 8 : i32
    %162 = arith.index_cast %161 : i32 to index
    %c0_80 = arith.constant 0 : index
    %163 = vector.load %arg12[%162, %c0_80] : memref<64x256xf32, #tpu.memory_space<vmem>>, vector<8x256xf32>
    %164 = arith.truncf %155 : vector<8x64xf32> to vector<8x64xbf16>
    %cst_81 = arith.constant dense<0.000000e+00> : vector<8x256xf32>
    %165 = tpu.matmul %164, %51, %cst_81 {dimension_numbers = #tpu.dot_dimension_numbers<[1], [0], [0], [1], [0, 0, 1, 1], [], []>} : vector<8x64xbf16>, vector<64x256xbf16>, vector<8x256xf32> -> vector<8x256xf32>
    %166 = arith.addf %163, %165 : vector<8x256xf32>
    %167 = vector.extract_strided_slice %166 {offsets = [0, 0], sizes = [8, 192], strides = [1, 1]} : vector<8x256xf32> to vector<8x192xf32>
    %168 = arith.negf %167 : vector<8x192xf32>
    %169 = math.exp %168 : vector<8x192xf32>
    %cst_82 = arith.constant 1.000000e+00 : f32
    %170 = vector.broadcast %cst_82 : f32 to vector<8x192xf32>
    %171 = arith.addf %170, %169 : vector<8x192xf32>
    %172 = arith.divf %170, %171 : vector<8x192xf32>
    %173 = vector.extract_strided_slice %166 {offsets = [0, 192], sizes = [8, 64], strides = [1, 1]} : vector<8x256xf32> to vector<8x64xf32>
    %174 = math.tanh %173 : vector<8x64xf32>
    %175 = vector.extract_strided_slice %172 {offsets = [0, 64], sizes = [8, 64], strides = [1, 1]} : vector<8x192xf32> to vector<8x64xf32>
    %176 = arith.mulf %175, %152 : vector<8x64xf32>
    %177 = vector.extract_strided_slice %172 {offsets = [0, 0], sizes = [8, 64], strides = [1, 1]} : vector<8x192xf32> to vector<8x64xf32>
    %178 = arith.mulf %177, %174 : vector<8x64xf32>
    %179 = arith.addf %176, %178 : vector<8x64xf32>
    %180 = vector.extract_strided_slice %172 {offsets = [0, 128], sizes = [8, 64], strides = [1, 1]} : vector<8x192xf32> to vector<8x64xf32>
    %181 = math.tanh %179 : vector<8x64xf32>
    %182 = arith.mulf %180, %181 : vector<8x64xf32>
    %c8_i32_83 = arith.constant 8 : i32
    %183 = arith.muli %c4_i32, %c8_i32_83 : i32
    %184 = tpu.assume_multiple %183, 8 : i32
    %185 = arith.index_cast %184 : i32 to index
    %c0_84 = arith.constant 0 : index
    %186 = vector.load %arg14[%185, %c0_84] : memref<64x64xf32, #tpu.memory_space<vmem>>, vector<8x64xf32>
    tpu.vector_store %arg14[%185, %c0_84], %182 {strides = array<i32>} : memref<64x64xf32, #tpu.memory_space<vmem>>, vector<8x64xf32>,
    %c5_i32 = arith.constant 5 : i32
    %c8_i32_85 = arith.constant 8 : i32
    %187 = arith.muli %c5_i32, %c8_i32_85 : i32
    %188 = tpu.assume_multiple %187, 8 : i32
    %189 = arith.index_cast %188 : i32 to index
    %c0_86 = arith.constant 0 : index
    %190 = vector.load %arg12[%189, %c0_86] : memref<64x256xf32, #tpu.memory_space<vmem>>, vector<8x256xf32>
    %191 = arith.truncf %182 : vector<8x64xf32> to vector<8x64xbf16>
    %cst_87 = arith.constant dense<0.000000e+00> : vector<8x256xf32>
    %192 = tpu.matmul %191, %51, %cst_87 {dimension_numbers = #tpu.dot_dimension_numbers<[1], [0], [0], [1], [0, 0, 1, 1], [], []>} : vector<8x64xbf16>, vector<64x256xbf16>, vector<8x256xf32> -> vector<8x256xf32>
    %193 = arith.addf %190, %192 : vector<8x256xf32>
    %194 = vector.extract_strided_slice %193 {offsets = [0, 0], sizes = [8, 192], strides = [1, 1]} : vector<8x256xf32> to vector<8x192xf32>
    %195 = arith.negf %194 : vector<8x192xf32>
    %196 = math.exp %195 : vector<8x192xf32>
    %cst_88 = arith.constant 1.000000e+00 : f32
    %197 = vector.broadcast %cst_88 : f32 to vector<8x192xf32>
    %198 = arith.addf %197, %196 : vector<8x192xf32>
    %199 = arith.divf %197, %198 : vector<8x192xf32>
    %200 = vector.extract_strided_slice %193 {offsets = [0, 192], sizes = [8, 64], strides = [1, 1]} : vector<8x256xf32> to vector<8x64xf32>
    %201 = math.tanh %200 : vector<8x64xf32>
    %202 = vector.extract_strided_slice %199 {offsets = [0, 64], sizes = [8, 64], strides = [1, 1]} : vector<8x192xf32> to vector<8x64xf32>
    %203 = arith.mulf %202, %179 : vector<8x64xf32>
    %204 = vector.extract_strided_slice %199 {offsets = [0, 0], sizes = [8, 64], strides = [1, 1]} : vector<8x192xf32> to vector<8x64xf32>
    %205 = arith.mulf %204, %201 : vector<8x64xf32>
    %206 = arith.addf %203, %205 : vector<8x64xf32>
    %207 = vector.extract_strided_slice %199 {offsets = [0, 128], sizes = [8, 64], strides = [1, 1]} : vector<8x192xf32> to vector<8x64xf32>
    %208 = math.tanh %206 : vector<8x64xf32>
    %209 = arith.mulf %207, %208 : vector<8x64xf32>
    %c8_i32_89 = arith.constant 8 : i32
    %210 = arith.muli %c5_i32, %c8_i32_89 : i32
    %211 = tpu.assume_multiple %210, 8 : i32
    %212 = arith.index_cast %211 : i32 to index
    %c0_90 = arith.constant 0 : index
    %213 = vector.load %arg14[%212, %c0_90] : memref<64x64xf32, #tpu.memory_space<vmem>>, vector<8x64xf32>
    tpu.vector_store %arg14[%212, %c0_90], %209 {strides = array<i32>} : memref<64x64xf32, #tpu.memory_space<vmem>>, vector<8x64xf32>,
    %c6_i32 = arith.constant 6 : i32
    %c8_i32_91 = arith.constant 8 : i32
    %214 = arith.muli %c6_i32, %c8_i32_91 : i32
    %215 = tpu.assume_multiple %214, 8 : i32
    %216 = arith.index_cast %215 : i32 to index
    %c0_92 = arith.constant 0 : index
    %217 = vector.load %arg12[%216, %c0_92] : memref<64x256xf32, #tpu.memory_space<vmem>>, vector<8x256xf32>
    %218 = arith.truncf %209 : vector<8x64xf32> to vector<8x64xbf16>
    %cst_93 = arith.constant dense<0.000000e+00> : vector<8x256xf32>
    %219 = tpu.matmul %218, %51, %cst_93 {dimension_numbers = #tpu.dot_dimension_numbers<[1], [0], [0], [1], [0, 0, 1, 1], [], []>} : vector<8x64xbf16>, vector<64x256xbf16>, vector<8x256xf32> -> vector<8x256xf32>
    %220 = arith.addf %217, %219 : vector<8x256xf32>
    %221 = vector.extract_strided_slice %220 {offsets = [0, 0], sizes = [8, 192], strides = [1, 1]} : vector<8x256xf32> to vector<8x192xf32>
    %222 = arith.negf %221 : vector<8x192xf32>
    %223 = math.exp %222 : vector<8x192xf32>
    %cst_94 = arith.constant 1.000000e+00 : f32
    %224 = vector.broadcast %cst_94 : f32 to vector<8x192xf32>
    %225 = arith.addf %224, %223 : vector<8x192xf32>
    %226 = arith.divf %224, %225 : vector<8x192xf32>
    %227 = vector.extract_strided_slice %220 {offsets = [0, 192], sizes = [8, 64], strides = [1, 1]} : vector<8x256xf32> to vector<8x64xf32>
    %228 = math.tanh %227 : vector<8x64xf32>
    %229 = vector.extract_strided_slice %226 {offsets = [0, 64], sizes = [8, 64], strides = [1, 1]} : vector<8x192xf32> to vector<8x64xf32>
    %230 = arith.mulf %229, %206 : vector<8x64xf32>
    %231 = vector.extract_strided_slice %226 {offsets = [0, 0], sizes = [8, 64], strides = [1, 1]} : vector<8x192xf32> to vector<8x64xf32>
    %232 = arith.mulf %231, %228 : vector<8x64xf32>
    %233 = arith.addf %230, %232 : vector<8x64xf32>
    %234 = vector.extract_strided_slice %226 {offsets = [0, 128], sizes = [8, 64], strides = [1, 1]} : vector<8x192xf32> to vector<8x64xf32>
    %235 = math.tanh %233 : vector<8x64xf32>
    %236 = arith.mulf %234, %235 : vector<8x64xf32>
    %c8_i32_95 = arith.constant 8 : i32
    %237 = arith.muli %c6_i32, %c8_i32_95 : i32
    %238 = tpu.assume_multiple %237, 8 : i32
    %239 = arith.index_cast %238 : i32 to index
    %c0_96 = arith.constant 0 : index
    %240 = vector.load %arg14[%239, %c0_96] : memref<64x64xf32, #tpu.memory_space<vmem>>, vector<8x64xf32>
    tpu.vector_store %arg14[%239, %c0_96], %236 {strides = array<i32>} : memref<64x64xf32, #tpu.memory_space<vmem>>, vector<8x64xf32>,
    %c7_i32 = arith.constant 7 : i32
    %c8_i32_97 = arith.constant 8 : i32
    %241 = arith.muli %c7_i32, %c8_i32_97 : i32
    %242 = tpu.assume_multiple %241, 8 : i32
    %243 = arith.index_cast %242 : i32 to index
    %c0_98 = arith.constant 0 : index
    %244 = vector.load %arg12[%243, %c0_98] : memref<64x256xf32, #tpu.memory_space<vmem>>, vector<8x256xf32>
    %245 = arith.truncf %236 : vector<8x64xf32> to vector<8x64xbf16>
    %cst_99 = arith.constant dense<0.000000e+00> : vector<8x256xf32>
    %246 = tpu.matmul %245, %51, %cst_99 {dimension_numbers = #tpu.dot_dimension_numbers<[1], [0], [0], [1], [0, 0, 1, 1], [], []>} : vector<8x64xbf16>, vector<64x256xbf16>, vector<8x256xf32> -> vector<8x256xf32>
    %247 = arith.addf %244, %246 : vector<8x256xf32>
    %248 = vector.extract_strided_slice %247 {offsets = [0, 0], sizes = [8, 192], strides = [1, 1]} : vector<8x256xf32> to vector<8x192xf32>
    %249 = arith.negf %248 : vector<8x192xf32>
    %250 = math.exp %249 : vector<8x192xf32>
    %cst_100 = arith.constant 1.000000e+00 : f32
    %251 = vector.broadcast %cst_100 : f32 to vector<8x192xf32>
    %252 = arith.addf %251, %250 : vector<8x192xf32>
    %253 = arith.divf %251, %252 : vector<8x192xf32>
    %254 = vector.extract_strided_slice %247 {offsets = [0, 192], sizes = [8, 64], strides = [1, 1]} : vector<8x256xf32> to vector<8x64xf32>
    %255 = math.tanh %254 : vector<8x64xf32>
    %256 = vector.extract_strided_slice %253 {offsets = [0, 64], sizes = [8, 64], strides = [1, 1]} : vector<8x192xf32> to vector<8x64xf32>
    %257 = arith.mulf %256, %233 : vector<8x64xf32>
    %258 = vector.extract_strided_slice %253 {offsets = [0, 0], sizes = [8, 64], strides = [1, 1]} : vector<8x192xf32> to vector<8x64xf32>
    %259 = arith.mulf %258, %255 : vector<8x64xf32>
    %260 = arith.addf %257, %259 : vector<8x64xf32>
    %261 = vector.extract_strided_slice %253 {offsets = [0, 128], sizes = [8, 64], strides = [1, 1]} : vector<8x192xf32> to vector<8x64xf32>
    %262 = math.tanh %260 : vector<8x64xf32>
    %263 = arith.mulf %261, %262 : vector<8x64xf32>
    %c8_i32_101 = arith.constant 8 : i32
    %264 = arith.muli %c7_i32, %c8_i32_101 : i32
    %265 = tpu.assume_multiple %264, 8 : i32
    %266 = arith.index_cast %265 : i32 to index
    %c0_102 = arith.constant 0 : index
    %267 = vector.load %arg14[%266, %c0_102] : memref<64x64xf32, #tpu.memory_space<vmem>>, vector<8x64xf32>
    tpu.vector_store %arg14[%266, %c0_102], %263 {strides = array<i32>} : memref<64x64xf32, #tpu.memory_space<vmem>>, vector<8x64xf32>,
    %c8_i32_103 = arith.constant 8 : i32
    %c0_104 = arith.constant 0 : index
    %c0_105 = arith.constant 0 : index
    %268 = vector.load %arg14[%c0_104, %c0_105] : memref<64x64xf32, #tpu.memory_space<vmem>>, vector<64x64xf32>
    %269 = arith.truncf %268 : vector<64x64xf32> to vector<64x64xbf16>
    %c0_106 = arith.constant 0 : index
    %c0_107 = arith.constant 0 : index
    %270 = vector.load %arg5[%c0_106, %c0_107] : memref<64x256xbf16, #tpu.memory_space<vmem>>, vector<64x256xbf16>
    %cst_108 = arith.constant dense<0.000000e+00> : vector<64x256xf32>
    %271 = tpu.matmul %269, %270, %cst_108 {dimension_numbers = #tpu.dot_dimension_numbers<[1], [0], [0], [1], [0, 0, 1, 1], [], []>} : vector<64x64xbf16>, vector<64x256xbf16>, vector<64x256xf32> -> vector<64x256xf32>
    %c0_109 = arith.constant 0 : index
    %c0_110 = arith.constant 0 : index
    %272 = vector.load %arg12[%c0_109, %c0_110] : memref<64x256xf32, #tpu.memory_space<vmem>>, vector<64x256xf32>
    tpu.vector_store %arg12[%c0_109, %c0_110], %271 {strides = array<i32>} : memref<64x256xf32, #tpu.memory_space<vmem>>, vector<64x256xf32>,
    %c0_111 = arith.constant 0 : index
    %c0_112 = arith.constant 0 : index
    %273 = vector.load %arg6[%c0_111, %c0_112] : memref<64x256xbf16, #tpu.memory_space<vmem>>, vector<64x256xbf16>
    %cst_113 = arith.constant dense<0.000000e+00> : vector<64x256xf32>
    %274 = tpu.matmul %269, %273, %cst_113 {dimension_numbers = #tpu.dot_dimension_numbers<[1], [0], [0], [1], [0, 0, 1, 1], [], []>} : vector<64x64xbf16>, vector<64x256xbf16>, vector<64x256xf32> -> vector<64x256xf32>
    %c0_114 = arith.constant 0 : index
    %c0_115 = arith.constant 0 : index
    %275 = vector.load %arg13[%c0_114, %c0_115] : memref<64x256xf32, #tpu.memory_space<vmem>>, vector<64x256xf32>
    tpu.vector_store %arg13[%c0_114, %c0_115], %274 {strides = array<i32>} : memref<64x256xf32, #tpu.memory_space<vmem>>, vector<64x256xf32>,
    %c0_116 = arith.constant 0 : index
    %c0_117 = arith.constant 0 : index
    %276 = vector.load %arg8[%c0_116, %c0_117] : memref<1x256xf32, #tpu.memory_space<vmem>>, vector<1x256xf32>
    %277 = vector.shape_cast %276 : vector<1x256xf32> to vector<1x256xf32>
    %278 = vector.broadcast %277 : vector<1x256xf32> to vector<8x256xf32>
    %c0_118 = arith.constant 0 : index
    %c0_119 = arith.constant 0 : index
    %279 = vector.load %arg12[%c0_118, %c0_119] : memref<64x256xf32, #tpu.memory_space<vmem>>, vector<8x256xf32>
    %c56_120 = arith.constant 56 : index
    %c0_121 = arith.constant 0 : index
    %280 = vector.load %arg12[%c56_120, %c0_121] : memref<64x256xf32, #tpu.memory_space<vmem>>, vector<8x256xf32>
    %c0_122 = arith.constant 0 : index
    %c0_123 = arith.constant 0 : index
    %281 = vector.load %arg13[%c0_122, %c0_123] : memref<64x256xf32, #tpu.memory_space<vmem>>, vector<8x256xf32>
    %c56_124 = arith.constant 56 : index
    %c0_125 = arith.constant 0 : index
    %282 = vector.load %arg13[%c56_124, %c0_125] : memref<64x256xf32, #tpu.memory_space<vmem>>, vector<8x256xf32>
    %283 = arith.addf %279, %282 : vector<8x256xf32>
    %284 = arith.addf %283, %278 : vector<8x256xf32>
    %c0_126 = arith.constant 0 : index
    %c0_127 = arith.constant 0 : index
    %285 = vector.load %arg12[%c0_126, %c0_127] : memref<64x256xf32, #tpu.memory_space<vmem>>, vector<8x256xf32>
    tpu.vector_store %arg12[%c0_126, %c0_127], %284 {strides = array<i32>} : memref<64x256xf32, #tpu.memory_space<vmem>>, vector<8x256xf32>,
    %286 = arith.addf %280, %281 : vector<8x256xf32>
    %287 = arith.addf %286, %278 : vector<8x256xf32>
    %c56_128 = arith.constant 56 : index
    %c0_129 = arith.constant 0 : index
    %288 = vector.load %arg12[%c56_128, %c0_129] : memref<64x256xf32, #tpu.memory_space<vmem>>, vector<8x256xf32>
    tpu.vector_store %arg12[%c56_128, %c0_129], %287 {strides = array<i32>} : memref<64x256xf32, #tpu.memory_space<vmem>>, vector<8x256xf32>,
    %c8_130 = arith.constant 8 : index
    %c0_131 = arith.constant 0 : index
    %289 = vector.load %arg12[%c8_130, %c0_131] : memref<64x256xf32, #tpu.memory_space<vmem>>, vector<8x256xf32>
    %c48_132 = arith.constant 48 : index
    %c0_133 = arith.constant 0 : index
    %290 = vector.load %arg12[%c48_132, %c0_133] : memref<64x256xf32, #tpu.memory_space<vmem>>, vector<8x256xf32>
    %c8_134 = arith.constant 8 : index
    %c0_135 = arith.constant 0 : index
    %291 = vector.load %arg13[%c8_134, %c0_135] : memref<64x256xf32, #tpu.memory_space<vmem>>, vector<8x256xf32>
    %c48_136 = arith.constant 48 : index
    %c0_137 = arith.constant 0 : index
    %292 = vector.load %arg13[%c48_136, %c0_137] : memref<64x256xf32, #tpu.memory_space<vmem>>, vector<8x256xf32>
    %293 = arith.addf %289, %292 : vector<8x256xf32>
    %294 = arith.addf %293, %278 : vector<8x256xf32>
    %c8_138 = arith.constant 8 : index
    %c0_139 = arith.constant 0 : index
    %295 = vector.load %arg12[%c8_138, %c0_139] : memref<64x256xf32, #tpu.memory_space<vmem>>, vector<8x256xf32>
    tpu.vector_store %arg12[%c8_138, %c0_139], %294 {strides = array<i32>} : memref<64x256xf32, #tpu.memory_space<vmem>>, vector<8x256xf32>,
    %296 = arith.addf %290, %291 : vector<8x256xf32>
    %297 = arith.addf %296, %278 : vector<8x256xf32>
    %c48_140 = arith.constant 48 : index
    %c0_141 = arith.constant 0 : index
    %298 = vector.load %arg12[%c48_140, %c0_141] : memref<64x256xf32, #tpu.memory_space<vmem>>, vector<8x256xf32>
    tpu.vector_store %arg12[%c48_140, %c0_141], %297 {strides = array<i32>} : memref<64x256xf32, #tpu.memory_space<vmem>>, vector<8x256xf32>,
    %c16_142 = arith.constant 16 : index
    %c0_143 = arith.constant 0 : index
    %299 = vector.load %arg12[%c16_142, %c0_143] : memref<64x256xf32, #tpu.memory_space<vmem>>, vector<8x256xf32>
    %c40_144 = arith.constant 40 : index
    %c0_145 = arith.constant 0 : index
    %300 = vector.load %arg12[%c40_144, %c0_145] : memref<64x256xf32, #tpu.memory_space<vmem>>, vector<8x256xf32>
    %c16_146 = arith.constant 16 : index
    %c0_147 = arith.constant 0 : index
    %301 = vector.load %arg13[%c16_146, %c0_147] : memref<64x256xf32, #tpu.memory_space<vmem>>, vector<8x256xf32>
    %c40_148 = arith.constant 40 : index
    %c0_149 = arith.constant 0 : index
    %302 = vector.load %arg13[%c40_148, %c0_149] : memref<64x256xf32, #tpu.memory_space<vmem>>, vector<8x256xf32>
    %303 = arith.addf %299, %302 : vector<8x256xf32>
    %304 = arith.addf %303, %278 : vector<8x256xf32>
    %c16_150 = arith.constant 16 : index
    %c0_151 = arith.constant 0 : index
    %305 = vector.load %arg12[%c16_150, %c0_151] : memref<64x256xf32, #tpu.memory_space<vmem>>, vector<8x256xf32>
    tpu.vector_store %arg12[%c16_150, %c0_151], %304 {strides = array<i32>} : memref<64x256xf32, #tpu.memory_space<vmem>>, vector<8x256xf32>,
    %306 = arith.addf %300, %301 : vector<8x256xf32>
    %307 = arith.addf %306, %278 : vector<8x256xf32>
    %c40_152 = arith.constant 40 : index
    %c0_153 = arith.constant 0 : index
    %308 = vector.load %arg12[%c40_152, %c0_153] : memref<64x256xf32, #tpu.memory_space<vmem>>, vector<8x256xf32>
    tpu.vector_store %arg12[%c40_152, %c0_153], %307 {strides = array<i32>} : memref<64x256xf32, #tpu.memory_space<vmem>>, vector<8x256xf32>,
    %c24_154 = arith.constant 24 : index
    %c0_155 = arith.constant 0 : index
    %309 = vector.load %arg12[%c24_154, %c0_155] : memref<64x256xf32, #tpu.memory_space<vmem>>, vector<8x256xf32>
    %c32_156 = arith.constant 32 : index
    %c0_157 = arith.constant 0 : index
    %310 = vector.load %arg12[%c32_156, %c0_157] : memref<64x256xf32, #tpu.memory_space<vmem>>, vector<8x256xf32>
    %c24_158 = arith.constant 24 : index
    %c0_159 = arith.constant 0 : index
    %311 = vector.load %arg13[%c24_158, %c0_159] : memref<64x256xf32, #tpu.memory_space<vmem>>, vector<8x256xf32>
    %c32_160 = arith.constant 32 : index
    %c0_161 = arith.constant 0 : index
    %312 = vector.load %arg13[%c32_160, %c0_161] : memref<64x256xf32, #tpu.memory_space<vmem>>, vector<8x256xf32>
    %313 = arith.addf %309, %312 : vector<8x256xf32>
    %314 = arith.addf %313, %278 : vector<8x256xf32>
    %c24_162 = arith.constant 24 : index
    %c0_163 = arith.constant 0 : index
    %315 = vector.load %arg12[%c24_162, %c0_163] : memref<64x256xf32, #tpu.memory_space<vmem>>, vector<8x256xf32>
    tpu.vector_store %arg12[%c24_162, %c0_163], %314 {strides = array<i32>} : memref<64x256xf32, #tpu.memory_space<vmem>>, vector<8x256xf32>,
    %316 = arith.addf %310, %311 : vector<8x256xf32>
    %317 = arith.addf %316, %278 : vector<8x256xf32>
    %c32_164 = arith.constant 32 : index
    %c0_165 = arith.constant 0 : index
    %318 = vector.load %arg12[%c32_164, %c0_165] : memref<64x256xf32, #tpu.memory_space<vmem>>, vector<8x256xf32>
    tpu.vector_store %arg12[%c32_164, %c0_165], %317 {strides = array<i32>} : memref<64x256xf32, #tpu.memory_space<vmem>>, vector<8x256xf32>,
    %c0_166 = arith.constant 0 : index
    %c0_167 = arith.constant 0 : index
    %319 = vector.load %arg7[%c0_166, %c0_167] : memref<64x256xbf16, #tpu.memory_space<vmem>>, vector<64x256xbf16>
    %c0_i32_168 = arith.constant 0 : i32
    %c8_i32_169 = arith.constant 8 : i32
    %320 = arith.muli %c0_i32_168, %c8_i32_169 : i32
    %321 = tpu.assume_multiple %320, 8 : i32
    %322 = arith.index_cast %321 : i32 to index
    %c0_170 = arith.constant 0 : index
    %323 = vector.load %arg12[%322, %c0_170] : memref<64x256xf32, #tpu.memory_space<vmem>>, vector<8x256xf32>
    %324 = arith.truncf %0 : vector<8x64xf32> to vector<8x64xbf16>
    %cst_171 = arith.constant dense<0.000000e+00> : vector<8x256xf32>
    %325 = tpu.matmul %324, %319, %cst_171 {dimension_numbers = #tpu.dot_dimension_numbers<[1], [0], [0], [1], [0, 0, 1, 1], [], []>} : vector<8x64xbf16>, vector<64x256xbf16>, vector<8x256xf32> -> vector<8x256xf32>
    %326 = arith.addf %323, %325 : vector<8x256xf32>
    %327 = vector.extract_strided_slice %326 {offsets = [0, 0], sizes = [8, 192], strides = [1, 1]} : vector<8x256xf32> to vector<8x192xf32>
    %328 = arith.negf %327 : vector<8x192xf32>
    %329 = math.exp %328 : vector<8x192xf32>
    %cst_172 = arith.constant 1.000000e+00 : f32
    %330 = vector.broadcast %cst_172 : f32 to vector<8x192xf32>
    %331 = arith.addf %330, %329 : vector<8x192xf32>
    %332 = arith.divf %330, %331 : vector<8x192xf32>
    %333 = vector.extract_strided_slice %326 {offsets = [0, 192], sizes = [8, 64], strides = [1, 1]} : vector<8x256xf32> to vector<8x64xf32>
    %334 = math.tanh %333 : vector<8x64xf32>
    %335 = vector.extract_strided_slice %332 {offsets = [0, 64], sizes = [8, 64], strides = [1, 1]} : vector<8x192xf32> to vector<8x64xf32>
    %336 = arith.mulf %335, %0 : vector<8x64xf32>
    %337 = vector.extract_strided_slice %332 {offsets = [0, 0], sizes = [8, 64], strides = [1, 1]} : vector<8x192xf32> to vector<8x64xf32>
    %338 = arith.mulf %337, %334 : vector<8x64xf32>
    %339 = arith.addf %336, %338 : vector<8x64xf32>
    %340 = vector.extract_strided_slice %332 {offsets = [0, 128], sizes = [8, 64], strides = [1, 1]} : vector<8x192xf32> to vector<8x64xf32>
    %341 = math.tanh %339 : vector<8x64xf32>
    %342 = arith.mulf %340, %341 : vector<8x64xf32>
    %343 = arith.addf %0, %342 : vector<8x64xf32>
    %c1_i32_173 = arith.constant 1 : i32
    %c8_i32_174 = arith.constant 8 : i32
    %344 = arith.muli %c1_i32_173, %c8_i32_174 : i32
    %345 = tpu.assume_multiple %344, 8 : i32
    %346 = arith.index_cast %345 : i32 to index
    %c0_175 = arith.constant 0 : index
    %347 = vector.load %arg12[%346, %c0_175] : memref<64x256xf32, #tpu.memory_space<vmem>>, vector<8x256xf32>
    %348 = arith.truncf %342 : vector<8x64xf32> to vector<8x64xbf16>
    %cst_176 = arith.constant dense<0.000000e+00> : vector<8x256xf32>
    %349 = tpu.matmul %348, %319, %cst_176 {dimension_numbers = #tpu.dot_dimension_numbers<[1], [0], [0], [1], [0, 0, 1, 1], [], []>} : vector<8x64xbf16>, vector<64x256xbf16>, vector<8x256xf32> -> vector<8x256xf32>
    %350 = arith.addf %347, %349 : vector<8x256xf32>
    %351 = vector.extract_strided_slice %350 {offsets = [0, 0], sizes = [8, 192], strides = [1, 1]} : vector<8x256xf32> to vector<8x192xf32>
    %352 = arith.negf %351 : vector<8x192xf32>
    %353 = math.exp %352 : vector<8x192xf32>
    %cst_177 = arith.constant 1.000000e+00 : f32
    %354 = vector.broadcast %cst_177 : f32 to vector<8x192xf32>
    %355 = arith.addf %354, %353 : vector<8x192xf32>
    %356 = arith.divf %354, %355 : vector<8x192xf32>
    %357 = vector.extract_strided_slice %350 {offsets = [0, 192], sizes = [8, 64], strides = [1, 1]} : vector<8x256xf32> to vector<8x64xf32>
    %358 = math.tanh %357 : vector<8x64xf32>
    %359 = vector.extract_strided_slice %356 {offsets = [0, 64], sizes = [8, 64], strides = [1, 1]} : vector<8x192xf32> to vector<8x64xf32>
    %360 = arith.mulf %359, %339 : vector<8x64xf32>
    %361 = vector.extract_strided_slice %356 {offsets = [0, 0], sizes = [8, 64], strides = [1, 1]} : vector<8x192xf32> to vector<8x64xf32>
    %362 = arith.mulf %361, %358 : vector<8x64xf32>
    %363 = arith.addf %360, %362 : vector<8x64xf32>
    %364 = vector.extract_strided_slice %356 {offsets = [0, 128], sizes = [8, 64], strides = [1, 1]} : vector<8x192xf32> to vector<8x64xf32>
    %365 = math.tanh %363 : vector<8x64xf32>
    %366 = arith.mulf %364, %365 : vector<8x64xf32>
    %367 = arith.addf %343, %366 : vector<8x64xf32>
    %c2_i32_178 = arith.constant 2 : i32
    %c8_i32_179 = arith.constant 8 : i32
    %368 = arith.muli %c2_i32_178, %c8_i32_179 : i32
    %369 = tpu.assume_multiple %368, 8 : i32
    %370 = arith.index_cast %369 : i32 to index
    %c0_180 = arith.constant 0 : index
    %371 = vector.load %arg12[%370, %c0_180] : memref<64x256xf32, #tpu.memory_space<vmem>>, vector<8x256xf32>
    %372 = arith.truncf %366 : vector<8x64xf32> to vector<8x64xbf16>
    %cst_181 = arith.constant dense<0.000000e+00> : vector<8x256xf32>
    %373 = tpu.matmul %372, %319, %cst_181 {dimension_numbers = #tpu.dot_dimension_numbers<[1], [0], [0], [1], [0, 0, 1, 1], [], []>} : vector<8x64xbf16>, vector<64x256xbf16>, vector<8x256xf32> -> vector<8x256xf32>
    %374 = arith.addf %371, %373 : vector<8x256xf32>
    %375 = vector.extract_strided_slice %374 {offsets = [0, 0], sizes = [8, 192], strides = [1, 1]} : vector<8x256xf32> to vector<8x192xf32>
    %376 = arith.negf %375 : vector<8x192xf32>
    %377 = math.exp %376 : vector<8x192xf32>
    %cst_182 = arith.constant 1.000000e+00 : f32
    %378 = vector.broadcast %cst_182 : f32 to vector<8x192xf32>
    %379 = arith.addf %378, %377 : vector<8x192xf32>
    %380 = arith.divf %378, %379 : vector<8x192xf32>
    %381 = vector.extract_strided_slice %374 {offsets = [0, 192], sizes = [8, 64], strides = [1, 1]} : vector<8x256xf32> to vector<8x64xf32>
    %382 = math.tanh %381 : vector<8x64xf32>
    %383 = vector.extract_strided_slice %380 {offsets = [0, 64], sizes = [8, 64], strides = [1, 1]} : vector<8x192xf32> to vector<8x64xf32>
    %384 = arith.mulf %383, %363 : vector<8x64xf32>
    %385 = vector.extract_strided_slice %380 {offsets = [0, 0], sizes = [8, 64], strides = [1, 1]} : vector<8x192xf32> to vector<8x64xf32>
    %386 = arith.mulf %385, %382 : vector<8x64xf32>
    %387 = arith.addf %384, %386 : vector<8x64xf32>
    %388 = vector.extract_strided_slice %380 {offsets = [0, 128], sizes = [8, 64], strides = [1, 1]} : vector<8x192xf32> to vector<8x64xf32>
    %389 = math.tanh %387 : vector<8x64xf32>
    %390 = arith.mulf %388, %389 : vector<8x64xf32>
    %391 = arith.addf %367, %390 : vector<8x64xf32>
    %c3_i32_183 = arith.constant 3 : i32
    %c8_i32_184 = arith.constant 8 : i32
    %392 = arith.muli %c3_i32_183, %c8_i32_184 : i32
    %393 = tpu.assume_multiple %392, 8 : i32
    %394 = arith.index_cast %393 : i32 to index
    %c0_185 = arith.constant 0 : index
    %395 = vector.load %arg12[%394, %c0_185] : memref<64x256xf32, #tpu.memory_space<vmem>>, vector<8x256xf32>
    %396 = arith.truncf %390 : vector<8x64xf32> to vector<8x64xbf16>
    %cst_186 = arith.constant dense<0.000000e+00> : vector<8x256xf32>
    %397 = tpu.matmul %396, %319, %cst_186 {dimension_numbers = #tpu.dot_dimension_numbers<[1], [0], [0], [1], [0, 0, 1, 1], [], []>} : vector<8x64xbf16>, vector<64x256xbf16>, vector<8x256xf32> -> vector<8x256xf32>
    %398 = arith.addf %395, %397 : vector<8x256xf32>
    %399 = vector.extract_strided_slice %398 {offsets = [0, 0], sizes = [8, 192], strides = [1, 1]} : vector<8x256xf32> to vector<8x192xf32>
    %400 = arith.negf %399 : vector<8x192xf32>
    %401 = math.exp %400 : vector<8x192xf32>
    %cst_187 = arith.constant 1.000000e+00 : f32
    %402 = vector.broadcast %cst_187 : f32 to vector<8x192xf32>
    %403 = arith.addf %402, %401 : vector<8x192xf32>
    %404 = arith.divf %402, %403 : vector<8x192xf32>
    %405 = vector.extract_strided_slice %398 {offsets = [0, 192], sizes = [8, 64], strides = [1, 1]} : vector<8x256xf32> to vector<8x64xf32>
    %406 = math.tanh %405 : vector<8x64xf32>
    %407 = vector.extract_strided_slice %404 {offsets = [0, 64], sizes = [8, 64], strides = [1, 1]} : vector<8x192xf32> to vector<8x64xf32>
    %408 = arith.mulf %407, %387 : vector<8x64xf32>
    %409 = vector.extract_strided_slice %404 {offsets = [0, 0], sizes = [8, 64], strides = [1, 1]} : vector<8x192xf32> to vector<8x64xf32>
    %410 = arith.mulf %409, %406 : vector<8x64xf32>
    %411 = arith.addf %408, %410 : vector<8x64xf32>
    %412 = vector.extract_strided_slice %404 {offsets = [0, 128], sizes = [8, 64], strides = [1, 1]} : vector<8x192xf32> to vector<8x64xf32>
    %413 = math.tanh %411 : vector<8x64xf32>
    %414 = arith.mulf %412, %413 : vector<8x64xf32>
    %415 = arith.addf %391, %414 : vector<8x64xf32>
    %c4_i32_188 = arith.constant 4 : i32
    %c8_i32_189 = arith.constant 8 : i32
    %416 = arith.muli %c4_i32_188, %c8_i32_189 : i32
    %417 = tpu.assume_multiple %416, 8 : i32
    %418 = arith.index_cast %417 : i32 to index
    %c0_190 = arith.constant 0 : index
    %419 = vector.load %arg12[%418, %c0_190] : memref<64x256xf32, #tpu.memory_space<vmem>>, vector<8x256xf32>
    %420 = arith.truncf %414 : vector<8x64xf32> to vector<8x64xbf16>
    %cst_191 = arith.constant dense<0.000000e+00> : vector<8x256xf32>
    %421 = tpu.matmul %420, %319, %cst_191 {dimension_numbers = #tpu.dot_dimension_numbers<[1], [0], [0], [1], [0, 0, 1, 1], [], []>} : vector<8x64xbf16>, vector<64x256xbf16>, vector<8x256xf32> -> vector<8x256xf32>
    %422 = arith.addf %419, %421 : vector<8x256xf32>
    %423 = vector.extract_strided_slice %422 {offsets = [0, 0], sizes = [8, 192], strides = [1, 1]} : vector<8x256xf32> to vector<8x192xf32>
    %424 = arith.negf %423 : vector<8x192xf32>
    %425 = math.exp %424 : vector<8x192xf32>
    %cst_192 = arith.constant 1.000000e+00 : f32
    %426 = vector.broadcast %cst_192 : f32 to vector<8x192xf32>
    %427 = arith.addf %426, %425 : vector<8x192xf32>
    %428 = arith.divf %426, %427 : vector<8x192xf32>
    %429 = vector.extract_strided_slice %422 {offsets = [0, 192], sizes = [8, 64], strides = [1, 1]} : vector<8x256xf32> to vector<8x64xf32>
    %430 = math.tanh %429 : vector<8x64xf32>
    %431 = vector.extract_strided_slice %428 {offsets = [0, 64], sizes = [8, 64], strides = [1, 1]} : vector<8x192xf32> to vector<8x64xf32>
    %432 = arith.mulf %431, %411 : vector<8x64xf32>
    %433 = vector.extract_strided_slice %428 {offsets = [0, 0], sizes = [8, 64], strides = [1, 1]} : vector<8x192xf32> to vector<8x64xf32>
    %434 = arith.mulf %433, %430 : vector<8x64xf32>
    %435 = arith.addf %432, %434 : vector<8x64xf32>
    %436 = vector.extract_strided_slice %428 {offsets = [0, 128], sizes = [8, 64], strides = [1, 1]} : vector<8x192xf32> to vector<8x64xf32>
    %437 = math.tanh %435 : vector<8x64xf32>
    %438 = arith.mulf %436, %437 : vector<8x64xf32>
    %439 = arith.addf %415, %438 : vector<8x64xf32>
    %c5_i32_193 = arith.constant 5 : i32
    %c8_i32_194 = arith.constant 8 : i32
    %440 = arith.muli %c5_i32_193, %c8_i32_194 : i32
    %441 = tpu.assume_multiple %440, 8 : i32
    %442 = arith.index_cast %441 : i32 to index
    %c0_195 = arith.constant 0 : index
    %443 = vector.load %arg12[%442, %c0_195] : memref<64x256xf32, #tpu.memory_space<vmem>>, vector<8x256xf32>
    %444 = arith.truncf %438 : vector<8x64xf32> to vector<8x64xbf16>
    %cst_196 = arith.constant dense<0.000000e+00> : vector<8x256xf32>
    %445 = tpu.matmul %444, %319, %cst_196 {dimension_numbers = #tpu.dot_dimension_numbers<[1], [0], [0], [1], [0, 0, 1, 1], [], []>} : vector<8x64xbf16>, vector<64x256xbf16>, vector<8x256xf32> -> vector<8x256xf32>
    %446 = arith.addf %443, %445 : vector<8x256xf32>
    %447 = vector.extract_strided_slice %446 {offsets = [0, 0], sizes = [8, 192], strides = [1, 1]} : vector<8x256xf32> to vector<8x192xf32>
    %448 = arith.negf %447 : vector<8x192xf32>
    %449 = math.exp %448 : vector<8x192xf32>
    %cst_197 = arith.constant 1.000000e+00 : f32
    %450 = vector.broadcast %cst_197 : f32 to vector<8x192xf32>
    %451 = arith.addf %450, %449 : vector<8x192xf32>
    %452 = arith.divf %450, %451 : vector<8x192xf32>
    %453 = vector.extract_strided_slice %446 {offsets = [0, 192], sizes = [8, 64], strides = [1, 1]} : vector<8x256xf32> to vector<8x64xf32>
    %454 = math.tanh %453 : vector<8x64xf32>
    %455 = vector.extract_strided_slice %452 {offsets = [0, 64], sizes = [8, 64], strides = [1, 1]} : vector<8x192xf32> to vector<8x64xf32>
    %456 = arith.mulf %455, %435 : vector<8x64xf32>
    %457 = vector.extract_strided_slice %452 {offsets = [0, 0], sizes = [8, 64], strides = [1, 1]} : vector<8x192xf32> to vector<8x64xf32>
    %458 = arith.mulf %457, %454 : vector<8x64xf32>
    %459 = arith.addf %456, %458 : vector<8x64xf32>
    %460 = vector.extract_strided_slice %452 {offsets = [0, 128], sizes = [8, 64], strides = [1, 1]} : vector<8x192xf32> to vector<8x64xf32>
    %461 = math.tanh %459 : vector<8x64xf32>
    %462 = arith.mulf %460, %461 : vector<8x64xf32>
    %463 = arith.addf %439, %462 : vector<8x64xf32>
    %c6_i32_198 = arith.constant 6 : i32
    %c8_i32_199 = arith.constant 8 : i32
    %464 = arith.muli %c6_i32_198, %c8_i32_199 : i32
    %465 = tpu.assume_multiple %464, 8 : i32
    %466 = arith.index_cast %465 : i32 to index
    %c0_200 = arith.constant 0 : index
    %467 = vector.load %arg12[%466, %c0_200] : memref<64x256xf32, #tpu.memory_space<vmem>>, vector<8x256xf32>
    %468 = arith.truncf %462 : vector<8x64xf32> to vector<8x64xbf16>
    %cst_201 = arith.constant dense<0.000000e+00> : vector<8x256xf32>
    %469 = tpu.matmul %468, %319, %cst_201 {dimension_numbers = #tpu.dot_dimension_numbers<[1], [0], [0], [1], [0, 0, 1, 1], [], []>} : vector<8x64xbf16>, vector<64x256xbf16>, vector<8x256xf32> -> vector<8x256xf32>
    %470 = arith.addf %467, %469 : vector<8x256xf32>
    %471 = vector.extract_strided_slice %470 {offsets = [0, 0], sizes = [8, 192], strides = [1, 1]} : vector<8x256xf32> to vector<8x192xf32>
    %472 = arith.negf %471 : vector<8x192xf32>
    %473 = math.exp %472 : vector<8x192xf32>
    %cst_202 = arith.constant 1.000000e+00 : f32
    %474 = vector.broadcast %cst_202 : f32 to vector<8x192xf32>
    %475 = arith.addf %474, %473 : vector<8x192xf32>
    %476 = arith.divf %474, %475 : vector<8x192xf32>
    %477 = vector.extract_strided_slice %470 {offsets = [0, 192], sizes = [8, 64], strides = [1, 1]} : vector<8x256xf32> to vector<8x64xf32>
    %478 = math.tanh %477 : vector<8x64xf32>
    %479 = vector.extract_strided_slice %476 {offsets = [0, 64], sizes = [8, 64], strides = [1, 1]} : vector<8x192xf32> to vector<8x64xf32>
    %480 = arith.mulf %479, %459 : vector<8x64xf32>
    %481 = vector.extract_strided_slice %476 {offsets = [0, 0], sizes = [8, 64], strides = [1, 1]} : vector<8x192xf32> to vector<8x64xf32>
    %482 = arith.mulf %481, %478 : vector<8x64xf32>
    %483 = arith.addf %480, %482 : vector<8x64xf32>
    %484 = vector.extract_strided_slice %476 {offsets = [0, 128], sizes = [8, 64], strides = [1, 1]} : vector<8x192xf32> to vector<8x64xf32>
    %485 = math.tanh %483 : vector<8x64xf32>
    %486 = arith.mulf %484, %485 : vector<8x64xf32>
    %487 = arith.addf %463, %486 : vector<8x64xf32>
    %c7_i32_203 = arith.constant 7 : i32
    %c8_i32_204 = arith.constant 8 : i32
    %488 = arith.muli %c7_i32_203, %c8_i32_204 : i32
    %489 = tpu.assume_multiple %488, 8 : i32
    %490 = arith.index_cast %489 : i32 to index
    %c0_205 = arith.constant 0 : index
    %491 = vector.load %arg12[%490, %c0_205] : memref<64x256xf32, #tpu.memory_space<vmem>>, vector<8x256xf32>
    %492 = arith.truncf %486 : vector<8x64xf32> to vector<8x64xbf16>
    %cst_206 = arith.constant dense<0.000000e+00> : vector<8x256xf32>
    %493 = tpu.matmul %492, %319, %cst_206 {dimension_numbers = #tpu.dot_dimension_numbers<[1], [0], [0], [1], [0, 0, 1, 1], [], []>} : vector<8x64xbf16>, vector<64x256xbf16>, vector<8x256xf32> -> vector<8x256xf32>
    %494 = arith.addf %491, %493 : vector<8x256xf32>
    %495 = vector.extract_strided_slice %494 {offsets = [0, 0], sizes = [8, 192], strides = [1, 1]} : vector<8x256xf32> to vector<8x192xf32>
    %496 = arith.negf %495 : vector<8x192xf32>
    %497 = math.exp %496 : vector<8x192xf32>
    %cst_207 = arith.constant 1.000000e+00 : f32
    %498 = vector.broadcast %cst_207 : f32 to vector<8x192xf32>
    %499 = arith.addf %498, %497 : vector<8x192xf32>
    %500 = arith.divf %498, %499 : vector<8x192xf32>
    %501 = vector.extract_strided_slice %494 {offsets = [0, 192], sizes = [8, 64], strides = [1, 1]} : vector<8x256xf32> to vector<8x64xf32>
    %502 = math.tanh %501 : vector<8x64xf32>
    %503 = vector.extract_strided_slice %500 {offsets = [0, 64], sizes = [8, 64], strides = [1, 1]} : vector<8x192xf32> to vector<8x64xf32>
    %504 = arith.mulf %503, %483 : vector<8x64xf32>
    %505 = vector.extract_strided_slice %500 {offsets = [0, 0], sizes = [8, 64], strides = [1, 1]} : vector<8x192xf32> to vector<8x64xf32>
    %506 = arith.mulf %505, %502 : vector<8x64xf32>
    %507 = arith.addf %504, %506 : vector<8x64xf32>
    %508 = vector.extract_strided_slice %500 {offsets = [0, 128], sizes = [8, 64], strides = [1, 1]} : vector<8x192xf32> to vector<8x64xf32>
    %509 = math.tanh %507 : vector<8x64xf32>
    %510 = arith.mulf %508, %509 : vector<8x64xf32>
    %511 = arith.addf %487, %510 : vector<8x64xf32>
    %c8_i32_208 = arith.constant 8 : i32
    %cst_209 = arith.constant 1.250000e-01 : f32
    %512 = vector.broadcast %cst_209 : f32 to vector<8x64xf32>
    %513 = arith.mulf %511, %512 : vector<8x64xf32>
    %514 = arith.truncf %513 : vector<8x64xf32> to vector<8x64xbf16>
    %c0_210 = arith.constant 0 : index
    %c0_211 = arith.constant 0 : index
    %515 = vector.load %arg9[%c0_210, %c0_211] : memref<64x5xbf16, #tpu.memory_space<vmem>>, vector<64x5xbf16>
    %cst_212 = arith.constant dense<0.000000e+00> : vector<8x5xf32>
    %516 = tpu.matmul %514, %515, %cst_212 {dimension_numbers = #tpu.dot_dimension_numbers<[1], [0], [0], [1], [0, 0, 1, 1], [], []>} : vector<8x64xbf16>, vector<64x5xbf16>, vector<8x5xf32> -> vector<8x5xf32>
    %c0_213 = arith.constant 0 : index
    %c0_214 = arith.constant 0 : index
    %517 = vector.load %arg10[%c0_213, %c0_214] : memref<1x5xf32, #tpu.memory_space<vmem>>, vector<1x5xf32>
    %518 = vector.broadcast %517 : vector<1x5xf32> to vector<8x5xf32>
    %519 = arith.addf %516, %518 : vector<8x5xf32>
    %c0_215 = arith.constant 0 : index
    %c0_216 = arith.constant 0 : index
    %520 = vector.load %arg11[%c0_215, %c0_216] : memref<8x5xf32, #tpu.memory_space<vmem>>, vector<8x5xf32>
    tpu.vector_store %arg11[%c0_215, %c0_216], %519 {strides = array<i32>} : memref<8x5xf32, #tpu.memory_space<vmem>>, vector<8x5xf32>,
    return
  }
}

</mosaic_0001>

<bundles_post_ra>
// kernel: lstm_model_forward.1
= control target key start
LH: loop header
LB: loop body
LE: loop exit
PB: predicated region body
PF: predicated region fallthrough
CT: control target
= control target key end

     0   :  { %16 = vsyncpa [#allocation6], 0  ;;  %s3485_s0 = inlined_call_operand.vmem [shape: bf16[64,16], index: 0, kind: input, shape index: {}]   ;;  %s3486_s1 = inlined_call_operand.vmem [shape: bf16[16,256], index: 1, kind: input, shape index: {}]   ;;  %s3487_s2 = inlined_call_operand.vmem [shape: bf16[16,256], index: 2, kind: input, shape index: {}]   ;;  %s3488_s3 = inlined_call_operand.vmem [shape: bf16[64,256], index: 3, kind: input, shape index: {}]   ;;  %s3489_s4 = inlined_call_operand.hbm [shape: f32[1,256], index: 4, kind: input, shape index: {}]   ;;  %s3490_s5 = inlined_call_operand.vmem [shape: bf16[64,256], index: 5, kind: input, shape index: {}]   ;;  %s3491_s6 = inlined_call_operand.hbm [shape: bf16[64,256], index: 6, kind: input, shape index: {}]   ;;  %s3492_s7 = inlined_call_operand.hbm [shape: bf16[64,256], index: 7, kind: input, shape index: {}]   ;;  %s3493_s8 = inlined_call_operand.vmem [shape: f32[1,256], index: 8, kind: input, shape index: {}]   ;;  %s3494_s9 = inlined_call_operand.vmem [shape: bf16[64,5], index: 9, kind: input, shape index: {}]   ;;  %s3495_s10 = inlined_call_operand.hbm [shape: f32[1,5], index: 10, kind: input, shape index: {}]   ;;  %s3496_s11 = inlined_call_operand.vmem [shape: f32[8,5], index: 11, kind: output, shape index: {}]  }
   0x1   :  { %17 = vsyncpa [#allocation8], 0 }
   0x2   :  { %18 = vsyncpa [#allocation11], 0  ;;  %s2803_s17 = smov [#allocation7]   ;;  %s2709_s21 = scalar_lea.hbm %s3491_s6, 1024 }
   0x3   :  { %s44_s18 = sshll.u32 %s2803_s17, 4  ;;  %p2710_p0 = scmp.ne.s32.totalorder %s3491_s6, %s2709_s21  ;;  %s45_s18 = int_to_ptr.vmem [resolvable:$true] %s44_s18 }
   0x4   :  { %p2713_p1 = scmp.lt.u32.totalorder %s2709_s21, %s3491_s6 }
   0x6   :  { %p2715_p2 = pnand %p2713_p1, %p2710_p0 }
   0x8   :  { %2718 = shalt.err (!%p2715_p2)
}
   0x9   :  { %s2719_s26 = scalar_lea.vmem %s45_s18, 1024  ;;  %p2724_p4 = scmp.lt.s32.totalorder %s45_s18, %s45_s18 }
   0xa   :  { %p2720_p3 = scmp.ne.s32.totalorder %s45_s18, %s2719_s26  ;;  %p2725_p5 = scmp.lt.s32.totalorder %s2719_s26, %s2719_s26 }
   0xc   :  { %p2726_p6 = por %p2725_p5, %p2724_p4 }
   0xe   :  { %p2727_p7 = pnand %p2726_p6, %p2720_p3 }
  0x10   :  { %2730 = shalt.err (!%p2727_p7)
}
  0x11   :  { %s2804_s27 = smov 128   ;;  %s2805_s28 = smov 8  }
  0x12   :  { %50 = dma.hbm_to_vmem [thread:$0]  %s3491_s6, 1024, %s45_s18, [#allocation8], %s2804_s27, %s2804_s27, %s2805_s28  }
  0x13   :  { %s2806_s12 = smov [#allocation5]   ;;  %s2807_s14 = smov [#allocation9]  }
  0x14   :  { %s33_s13 = sshll.u32 %s2806_s12, 4  ;;  %s56_s15 = sshll.u32 %s2807_s14, 4  ;;  %s34_s13 = int_to_ptr.vmem [resolvable:$true] %s33_s13  ;;  %s57_s15 = int_to_ptr.vmem [resolvable:$true] %s56_s15 }
  0x15   :  { %s2731_s19 = scalar_lea.hbm %s3489_s4, 32 }
  0x16   :  { %p2732_p8 = scmp.ne.s32.totalorder %s3489_s4, %s2731_s19  ;;  %p2735_p9 = scmp.lt.u32.totalorder %s2731_s19, %s3489_s4 }
  0x18   :  { %p2737_p10 = pnand %p2735_p9, %p2732_p8 }
  0x1a   :  { %2740 = shalt.err (!%p2737_p10)
}
  0x1b   :  { %s2741_s6 = scalar_lea.vmem %s34_s13, 32  ;;  %p2746_p12 = scmp.lt.s32.totalorder %s34_s13, %s34_s13 }
  0x1c   :  { %p2742_p11 = scmp.ne.s32.totalorder %s34_s13, %s2741_s6  ;;  %p2747_p13 = scmp.lt.s32.totalorder %s2741_s6, %s2741_s6 }
  0x1e   :  { %p2748_p0 = por %p2747_p13, %p2746_p12 }
  0x20   :  { %p2749_p1 = pnand %p2748_p0, %p2742_p11 }
  0x22   :  { %2752 = shalt.err (!%p2749_p1)
}
  0x23   :  { %36 = dma.hbm_to_vmem [thread:$0]  %s3489_s4, 32, %s34_s13, [#allocation6]  }
  0x24   :  { %s2753_s29 = scalar_lea.hbm %s3492_s7, 1024 }
  0x25   :  { %p2754_p2 = scmp.ne.s32.totalorder %s3492_s7, %s2753_s29  ;;  %p2757_p3 = scmp.lt.u32.totalorder %s2753_s29, %s3492_s7 }
  0x27   :  { %p2759_p4 = pnand %p2757_p3, %p2754_p2 }
  0x29   :  { %2762 = shalt.err (!%p2759_p4)
}
  0x2a   :  { %s2763_s17 = scalar_lea.vmem %s57_s15, 1024  ;;  %p2768_p6 = scmp.lt.s32.totalorder %s57_s15, %s57_s15 }
  0x2b   :  { %p2764_p5 = scmp.ne.s32.totalorder %s57_s15, %s2763_s17  ;;  %p2769_p7 = scmp.lt.s32.totalorder %s2763_s17, %s2763_s17 }
  0x2d   :  { %p2770_p8 = por %p2769_p7, %p2768_p6 }
  0x2f   :  { %p2771_p9 = pnand %p2770_p8, %p2764_p5 }
  0x31   :  { %2774 = shalt.err (!%p2771_p9)
}
  0x32   :  { %62 = dma.hbm_to_vmem [thread:$0]  %s3492_s7, 1024, %s57_s15, [#allocation8], %s2804_s27, %s2804_s27, %s2805_s28  }
  0x33   :  { %s2808_s19 = smov [#allocation10]   ;;  %s2775_s23 = scalar_lea.hbm %s3495_s10, 16 }
  0x34   :  { %s73_s20 = sshll.u32 %s2808_s19, 4  ;;  %p2776_p10 = scmp.ne.s32.totalorder %s3495_s10, %s2775_s23  ;;  %s74_s20 = int_to_ptr.vmem [resolvable:$true] %s73_s20 }
  0x35   :  { %p2779_p11 = scmp.lt.u32.totalorder %s2775_s23, %s3495_s10 }
  0x37   :  { %p2781_p12 = pnand %p2779_p11, %p2776_p10 }
  0x39   :  { %2784 = shalt.err (!%p2781_p12)
}
  0x3a   :  { %s2785_s26 = scalar_lea.vmem %s74_s20, 16  ;;  %s2789_s7 = scalar_lea.vmem %s74_s20, 32 }
  0x3b   :  { %p2786_p13 = scmp.ne.s32.totalorder %s74_s20, %s2785_s26  ;;  %p2790_p0 = scmp.lt.s32.totalorder %s74_s20, %s74_s20 }
  0x3c   :  { %p2791_p1 = scmp.lt.s32.totalorder %s2789_s7, %s2785_s26 }
  0x3e   :  { %p2792_p2 = por %p2791_p1, %p2790_p0 }
  0x40   :  { %p2793_p3 = pnand %p2792_p2, %p2786_p13 }
  0x42   :  { %2796 = shalt.err (!%p2793_p3)
}
  0x43   :  { %76 = dma.hbm_to_vmem [thread:$0]  %s3495_s10, 16, %s74_s20, [#allocation11]  }
  0x44   :  { %2797 = dma.done.wait [#allocation6], 32  }
  0x45   :  { %2798 = vsyncadd [#allocation6], 4294967264 }
  0x46   :  { %2799 = dma.done.wait [#allocation8], 2048  }
  0x47   :  { %2800 = vsyncadd [#allocation8], 4294965248 }
  0x48   :  { %2801 = dma.done.wait [#allocation11], 16  }
  0x49   :  { %2802 = vsyncadd [#allocation11], 4294967280  ;;  %v2809_v0 = vmov 0   ;;  %v2455_v1 = vld [vmem:[%s3486_s1 + $0x4] ss:$8 sps:$4 sm:$0xff]   ;;  %vm130_vm0 = vcmask 130048   ;;  %v335_v17 = vlaneseq }
  0x4a   :  { %175 = vmatprep.mubr.bf16.mxu0 %v2809_v0  ;;  %205 = vmatprep.mubr.bf16.mxu1 %v2809_v0  ;;  %v2457_v2 = vld [vmem:[%s3486_s1] ss:$8 sps:$4 sm:$0xff]   ;;  %v2459_v4 = vld [vmem:[%s3485_s0 + $0x18] sm:$0xff]   ;;  %v2462_v6 = vld [vmem:[%s3487_s2 + $0x4] ss:$8 sps:$4 sm:$0xff]   ;;  %vm478_vm1 = vcmask 523264  }
  0x4b   :  { %143 = vmatprep.subr.bf16.mxu0 %v2455_v1  ;;  %2443 = vmatprep.subr.bf16.mxu1 %v2455_v1  ;;  %v2458_v3 = vld [vmem:[%s3485_s0] sm:$0xff]   ;;  %v2964_v9 = vld [vmem:[%s3488_s3 + $0x14] ss:$8 sps:$4 sm:$0xff]   ;;  %v2463_v10 = vld [vmem:[%s3485_s0 + $0x8] sm:$0xff]   ;;  %v3037_v18 = vshrl.u32 %v335_v17, 7  ;;  %vm2812_vm2 = vmmov 0  }
  0x4c   :  { %144 = vmatpush1.bf16.msra.mxu0 %v2457_v2  ;;  %2444 = vmatpush1.bf16.msra.mxu1 %v2457_v2  ;;  %v2460_v5 = vld [vmem:[%s3487_s2] ss:$8 sps:$4 sm:$0xff]   ;;  %v2952_v7 = vld [vmem:[%s3488_s3 + $0x4] ss:$8 sps:$4 sm:$0xff]   ;;  %v2976_v11 = vld [vmem:[%s3488_s3 + $0x10] ss:$8 sps:$4 sm:$0xff]  }
  0x4d   :  { %v2957_v8 = vld [vmem:[%s3488_s3] ss:$8 sps:$4 sm:$0xff]   ;;  %244 = vmatprep.subr.bf16.mxu1 %v2462_v6  ;;  %482 = vmatprep.subr.bf16.mxu0 %v2952_v7  ;;  %v2981_v12 = vld [vmem:[%s3488_s3 + $0x24] ss:$8 sps:$4 sm:$0xff]   ;;  %v2995_v14 = vld [vmem:[%s3488_s3 + $0x34] ss:$8 sps:$4 sm:$0xff]  }
  0x4e   :  { %v2988_v13 = vld [vmem:[%s3488_s3 + $0x20] ss:$8 sps:$4 sm:$0xff]   ;;  %v2467_v15 = vld [vmem:[%s3485_s0 + $0x10] sm:$0xff]   ;;  %v337_v27 = vsub.s32 0, %v3037_v18  ;;  %v341_v29 = vsub.s32 1, %v3037_v18  ;;  %s2810_s0 = smov 64  }
  0x4f   :  { %2324 = vmatmul.mubr.msk.bf16.vlgmr.msra.gmra.mrb[0].mxu0 %vm130_vm0, %v2458_v3  ;;  %2327 = vmatmul.mubr.msk.bf16.vlgmr.msra.gmra.mrb[0].mxu1 %vm130_vm0, %v2459_v4  ;;  %v3007_v16 = vld [vmem:[%s3488_s3 + $0x30] ss:$8 sps:$4 sm:$0xff]   ;;  %v333_v28 = vld [vmem:[#allocation5] sm:$0x3]  ;;  %vm2302_vm3 = vcmask 39936  }
  0x50   :  { %185 = vmatprep.mubr.bf16.mxu0 %v2809_v0  ;;  %245 = vmatpush1.bf16.msra.mxu1 %v2460_v5  ;;  %v338_v30 = vrot.slane %v333_v28, %v337_v27  ;;  %v342_v33 = vrot.slane %v333_v28, %v341_v29 }
  0x51   :  { %276 = vmatprep.mubr.bf16.mxu1 %v2809_v0  ;;  %565 = vmatprep.subr.bf16.mxu1 %v2952_v7 }
  0x52   :  { %483 = vmatpush1.bf16.msra.mxu0 %v2957_v8 }
  0x53   :  { %484 = vmatprep.subr.bf16.mxu0 %v2964_v9 }
  0x56   :  { %485 = vmatpush1.bf16.msra.mxu0 %v2976_v11 }
  0x57   :  { %2325 = vmatmul.mubr.msk.bf16.gmra.mrb[4].mxu0 %vm130_vm0, %v2463_v10  ;;  %2330 = vmatmul.mubr.msk.bf16.vlgmr.msra.gmra.mrb[4].mxu1 %vm130_vm0, %v2458_v3 }
  0x58   :  { %195 = vmatprep.mubr.bf16.mxu0 %v2809_v0  ;;  %286 = vmatprep.mubr.bf16.mxu1 %v2809_v0 }
  0x59   :  { %566 = vmatpush1.bf16.msra.mxu1 %v2957_v8  ;;  %486 = vmatprep.subr.bf16.mxu0 %v2981_v12 }
  0x5a   :  { %567 = vmatprep.subr.bf16.mxu1 %v2964_v9  ;;  %487 = vmatpush1.bf16.msra.mxu0 %v2988_v13 }
  0x5b   :  { %488 = vmatprep.subr.bf16.mxu0 %v2995_v14 }
  0x5d   :  { %568 = vmatpush1.bf16.msra.mxu1 %v2976_v11 }
  0x5e   :  { %569 = vmatprep.subr.bf16.mxu1 %v2981_v12  ;;  %489 = vmatpush1.bf16.msra.mxu0 %v3007_v16 }
  0x5f   :  { %2326 = vmatmul.mubr.msk.bf16.gmra.mrb[8].mxu0 %vm130_vm0, %v2467_v15  ;;  %2331 = vmatmul.mubr.msk.bf16.gmra.mrb[8].mxu1 %vm130_vm0, %v2463_v10 }
  0x60   :  { %296 = vmatprep.mubr.bf16.mxu1 %v2809_v0  ;;  %514 = vmatprep.mubr.bf16.mxu0 %v2809_v0 }
  0x61   :  { %570 = vmatpush1.bf16.msra.mxu1 %v2988_v13  ;;  %649 = vmatprep.subr.bf16.mxu0 %v2952_v7 }
  0x62   :  { %571 = vmatprep.subr.bf16.mxu1 %v2995_v14 }
  0x65   :  { %572 = vmatpush1.bf16.msra.mxu1 %v3007_v16 }
  0x66   :  { %733 = vmatprep.subr.bf16.mxu1 %v2952_v7 }
  0x67   :  { %2332 = vmatmul.mubr.msk.bf16.gmra.mrb[12].mxu1 %vm130_vm0, %v2467_v15  ;;  %515 = vmatmul.mubr.bf16.vlgmr.msra.gmra.mrb[12].mxu0 %v2809_v0 }
  0x68   :  { %306 = vmatprep.mubr.bf16.mxu1 %v2809_v0  ;;  %650 = vmatpush1.bf16.msra.mxu0 %v2957_v8 }
  0x69   :  { %651 = vmatprep.subr.bf16.mxu0 %v2964_v9  ;;  %681 = vmatprep.mubr.bf16.mxu0 %v2809_v0 }
  0x6c   :  { %652 = vmatpush1.bf16.msra.mxu0 %v2976_v11 }
  0x6d   :  { %653 = vmatprep.subr.bf16.mxu0 %v2981_v12 }
  0x6f   :  { %2333 = vmatmul.mubr.msk.bf16.gmra.mrb[16].mxu1 %vm130_vm0, %v2459_v4 }
  0x70   :  { %597 = vmatprep.mubr.bf16.mxu1 %v2809_v0  ;;  %654 = vmatpush1.bf16.msra.mxu0 %v2988_v13 }
  0x71   :  { %655 = vmatprep.subr.bf16.mxu0 %v2995_v14 }
  0x74   :  { %656 = vmatpush1.bf16.msra.mxu0 %v3007_v16 }
  0x75   :  { %817 = vmatprep.subr.bf16.mxu0 %v2952_v7 }
 0x122   :  { %v207_v19 = vpop.f32.mrb[0].mxu1  ;;  %v3039_v20 = vpop.f32.mrb[0].mxu0 }
 0x123   :  { %v209_v21 = vpop.f32.mrb[1].mxu1  ;;  %v3041_v22 = vpop.f32.mrb[1].mxu0 }
 0x124   :  { %v211_v23 = vpop.f32.mrb[2].mxu1  ;;  %v181_v24 = vpop.f32.mrb[2].mxu0 }
 0x125   :  { %v213_v25 = vpop.f32.mrb[3].mxu1  ;;  %v183_v26 = vpop.f32.mrb[3].mxu0 }
 0x12a   :  { %v278_v31 = vpop.f32.mrb[4].mxu1  ;;  %v187_v32 = vpop.f32.mrb[4].mxu0 }
 0x12b   :  { %v359_v34 = vadd.f32 %v278_v31, %v211_v23  ;;  %v280_v35 = vpop.f32.mrb[5].mxu1  ;;  %v189_v36 = vpop.f32.mrb[5].mxu0 }
 0x12c   :  { %v360_v37 = vadd.f32 %v280_v35, %v213_v25  ;;  %v282_v38 = vpop.f32.mrb[6].mxu1  ;;  %v191_v39 = vpop.f32.mrb[6].mxu0 }
 0x12d   :  { %v379_v40 = vadd.f32 %v282_v38, %v207_v19  ;;  %v284_v41 = vpop.f32.mrb[7].mxu1  ;;  %v193_v42 = vpop.f32.mrb[7].mxu0  ;;  %v3049_v43 = vadd.f32 %v359_v34, %v338_v30 }
 0x12e   :  { %v380_v44 = vadd.f32 %v284_v41, %v209_v21  ;;  %v3051_v45 = vadd.f32 %v360_v37, %v342_v33 }
 0x12f   :  { %v3053_v46 = vadd.f32 %v379_v40, %v338_v30 }
 0x130   :  { %v3055_v47 = vadd.f32 %v380_v44, %v342_v33 }
 0x132   :  { %v197_v48 = vpop.f32.mrb[8].mxu0  ;;  %v288_v49 = vpop.f32.mrb[8].mxu1 }
 0x133   :  { %v199_v50 = vpop.f32.mrb[9].mxu0  ;;  %v290_v51 = vpop.f32.mrb[9].mxu1 }
 0x134   :  { %v201_v52 = vpop.f32.mrb[10].mxu0  ;;  %v292_v53 = vpop.f32.mrb[10].mxu1 }
 0x135   :  { %v399_v54 = vadd.f32 %v288_v49, %v201_v52  ;;  %v419_v55 = vadd.f32 %v292_v53, %v197_v48  ;;  %v203_v56 = vpop.f32.mrb[11].mxu0  ;;  %v294_v57 = vpop.f32.mrb[11].mxu1 }
 0x136   :  { %v400_v58 = vadd.f32 %v290_v51, %v203_v56  ;;  %v420_v59 = vadd.f32 %v294_v57, %v199_v50 }
 0x137   :  { %v3057_v60 = vadd.f32 %v419_v55, %v338_v30  ;;  %v3059_v61 = vadd.f32 %v399_v54, %v338_v30 }
 0x138   :  { %v3061_v62 = vadd.f32 %v420_v59, %v342_v33  ;;  %v3063_v63 = vadd.f32 %v400_v58, %v342_v33 }
 0x13a   :  { %v298_v1 = vpop.f32.mrb[12].mxu1  ;;  %v516_v2 = vpop.f32.mrb[12].mxu0 }
 0x13b   :  { %v413_v3 = vadd.f32 %v298_v1, %v191_v39  ;;  %v300_v4 = vpop.f32.mrb[13].mxu1  ;;  %v518_v5 = vpop.f32.mrb[13].mxu0 }
 0x13c   :  { %v414_v6 = vadd.f32 %v300_v4, %v193_v42  ;;  %v302_v10 = vpop.f32.mrb[14].mxu1  ;;  %v520_v15 = vpop.f32.mrb[14].mxu0 }
 0x13d   :  { %v393_v17 = vadd.f32 %v302_v10, %v187_v32  ;;  %v304_v19 = vpop.f32.mrb[15].mxu1  ;;  %v521_v21 = vpop.f32.mrb[15].mxu0  ;;  %v3065_v23 = vadd.f32 %v413_v3, %v338_v30 }
 0x13e   :  { %v394_v25 = vadd.f32 %v304_v19, %v189_v36  ;;  %v3067_v28 = vadd.f32 %v414_v6, %v342_v33 }
 0x13f   :  { %v3069_v31 = vadd.f32 %v393_v17, %v338_v30 }
 0x140   :  { %v3071_v34 = vadd.f32 %v394_v25, %v342_v33 }
 0x142   :  { %v308_v35 = vpop.f32.mrb[16].mxu1 }
 0x143   :  { %v373_v37 = vadd.f32 %v308_v35, %v181_v24  ;;  %v310_v38 = vpop.f32.mrb[17].mxu1 }
 0x144   :  { %v374_v39 = vadd.f32 %v310_v38, %v183_v26  ;;  %v312_v40 = vpop.f32.mrb[18].mxu1 }
 0x145   :  { %v353_v41 = vadd.f32 %v312_v40, %v3039_v20  ;;  %v314_v42 = vpop.f32.mrb[19].mxu1  ;;  %v375_v32 = vadd.f32 %v373_v37, %v338_v30 }
 0x146   :  { %v354_v44 = vadd.f32 %v314_v42, %v3041_v22  ;;  %v376_v48 = vadd.f32 %v374_v39, %v342_v33 }
 0x147   :  { %v355_v49 = vadd.f32 %v353_v41, %v338_v30 }
 0x148   :  { %v356_v36 = vadd.f32 %v354_v44, %v342_v33 }
 0x149   :  { %v523_v50 = vadd.f32 %v516_v2, %v355_v49 }
 0x14a   :  { %v524_v51 = vadd.f32 %v518_v5, %v356_v36 }
 0x14b   :  { %v2342_v24 = vmul.f32 -1.442695, %v523_v50 }
 0x14c   :  { %2517 = vtanh.f32 %v524_v51  ;;  %v2343_v57 = vmul.f32 -1.442695, %v524_v51 }
 0x14d   :  { %2519 = vpow2.f32 %v2342_v24 }
 0x156   :  { %v2518_v52 = vpop.eup %2517 }
 0x157   :  { %540 = vrot.lane.b32.xlu0 %v2518_v52, %s2810_s0  ;;  %v2520_v26 = vpop.eup %2519 }
 0x158   :  { %v531_v53 = vadd.f32 1.0, %v2520_v26 }
 0x15a   :  { %2521 = vrcp.f32 %v531_v53 }
 0x164   :  { %v2522_v20 = vpop.eup %2521 }
 0x165   :  { %v538_v22 = vmul.f32 0.0, %v2522_v20 }
 0x1c9   :  { %v541_v54 = vpop.permute.xlu0 %540 }
 0x1ca   :  { %v543_v55 = vmul.f32 %v2522_v20, %v541_v54 }
 0x1cc   :  { %545 = vrot.lane.b32.xlu0 %v543_v55, %s2810_s0 }
 0x23e   :  { %v546_v30 = vpop.permute.xlu0 %545 }
 0x23f   :  { %v548_v33 = vadd.f32 %v546_v30, %v538_v22 }
 0x241   :  { %2523 = vtanh.f32 %v548_v33 }
 0x242   :  { %2525 = vpow2.f32 %v2343_v57 }
 0x24b   :  { %v2524_v56 = vpop.eup %2523 }
 0x24c   :  { %551 = vrot.lane.b32.xlu1 %v2524_v56, %s2810_s0  ;;  %v2526_v58 = vpop.eup %2525 }
 0x24d   :  { %v532_v59 = vadd.f32 1.0, %v2526_v58 }
 0x24f   :  { %2527 = vrcp.f32 %v532_v59 }
 0x259   :  { %v2528_v1 = vpop.eup %2527 }
 0x2be   :  { %v552_v2 = vpop.permute.xlu1 %551 }
 0x2bf   :  { %v554_v3 = vmul.f32 %v2528_v1, %v552_v2 }
 0x2c1   :  { %555 = vst.msk [vmem:[#allocation4] sm:$0xff] %vm478_vm1, %v554_v3  ;;  %v561_v4 = vpack.c.bf16 %v554_v3, %v554_v3 }
 0x2c3   :  { %2344 = vmatmul.mubr.msk.bf16.vlgmr.msra.gmra.mrb[20].mxu1 %vm478_vm1, %v561_v4 }
 0x2c4   :  { %734 = vmatpush1.bf16.msra.mxu1 %v2957_v8  ;;  %765 = vmatprep.mubr.bf16.mxu1 %v2809_v0 }
 0x2c5   :  { %735 = vmatprep.subr.bf16.mxu1 %v2964_v9 }
 0x2c8   :  { %736 = vmatpush1.bf16.msra.mxu1 %v2976_v11 }
 0x2c9   :  { %737 = vmatprep.subr.bf16.mxu1 %v2981_v12 }
 0x2cc   :  { %738 = vmatpush1.bf16.msra.mxu1 %v2988_v13 }
 0x2cd   :  { %739 = vmatprep.subr.bf16.mxu1 %v2995_v14 }
 0x2d0   :  { %740 = vmatpush1.bf16.msra.mxu1 %v3007_v16 }
 0x2d1   :  { %901 = vmatprep.subr.bf16.mxu1 %v2952_v7 }
 0x396   :  { %v599_v5 = vpop.f32.mrb[20].mxu1 }
 0x397   :  { %v606_v6 = vadd.f32 %v599_v5, %v375_v32  ;;  %v601_v10 = vpop.f32.mrb[21].mxu1 }
 0x398   :  { %v607_v15 = vadd.f32 %v601_v10, %v376_v48  ;;  %v603_v17 = vpop.f32.mrb[22].mxu1 }
 0x399   :  { %v604_v19 = vpop.f32.mrb[23].mxu1  ;;  %v2345_v25 = vmul.f32 -1.442695, %v606_v6 }
 0x39a   :  { %2529 = vtanh.f32 %v607_v15  ;;  %v2346_v48 = vmul.f32 -1.442695, %v607_v15 }
 0x39b   :  { %2531 = vpow2.f32 %v2345_v25 }
 0x3a4   :  { %v2530_v21 = vpop.eup %2529 }
 0x3a5   :  { %623 = vrot.lane.b32.xlu1 %v2530_v21, %s2810_s0  ;;  %v2532_v35 = vpop.eup %2531 }
 0x3a6   :  { %v614_v37 = vadd.f32 1.0, %v2532_v35 }
 0x3a8   :  { %2533 = vrcp.f32 %v614_v37 }
 0x3b2   :  { %v2534_v38 = vpop.eup %2533 }
 0x3b3   :  { %v621_v41 = vmul.f32 %v2534_v38, %v548_v33 }
 0x417   :  { %v624_v39 = vpop.permute.xlu1 %623 }
 0x418   :  { %v626_v40 = vmul.f32 %v2534_v38, %v624_v39 }
 0x41a   :  { %628 = vrot.lane.b32.xlu0 %v626_v40, %s2810_s0 }
 0x48c   :  { %v629_v42 = vpop.permute.xlu0 %628 }
 0x48d   :  { %v631_v32 = vadd.f32 %v629_v42, %v621_v41 }
 0x48f   :  { %2535 = vtanh.f32 %v631_v32 }
 0x490   :  { %2537 = vpow2.f32 %v2346_v48 }
 0x499   :  { %v2536_v44 = vpop.eup %2535 }
 0x49a   :  { %634 = vrot.lane.b32.xlu1 %v2536_v44, %s2810_s0  ;;  %v2538_v49 = vpop.eup %2537 }
 0x49b   :  { %v615_v36 = vadd.f32 1.0, %v2538_v49 }
 0x49d   :  { %2539 = vrcp.f32 %v615_v36 }
 0x4a7   :  { %v2540_v50 = vpop.eup %2539 }
 0x50c   :  { %v635_v51 = vpop.permute.xlu1 %634 }
 0x50d   :  { %v637_v52 = vmul.f32 %v2540_v50, %v635_v51 }
 0x50f   :  { %639 = vst.msk [vmem:[#allocation4 + $0x8] sm:$0xff] %vm478_vm1, %v637_v52  ;;  %v645_v24 = vpack.c.bf16 %v637_v52, %v637_v52 }
 0x511   :  { %2347 = vmatmul.mubr.msk.bf16.vlgmr.msra.gmra.mrb[16].mxu0 %vm478_vm1, %v645_v24 }
 0x512   :  { %818 = vmatpush1.bf16.msra.mxu0 %v2957_v8  ;;  %849 = vmatprep.mubr.bf16.mxu0 %v2809_v0 }
 0x513   :  { %819 = vmatprep.subr.bf16.mxu0 %v2964_v9 }
 0x516   :  { %820 = vmatpush1.bf16.msra.mxu0 %v2976_v11 }
 0x517   :  { %821 = vmatprep.subr.bf16.mxu0 %v2981_v12 }
 0x51a   :  { %822 = vmatpush1.bf16.msra.mxu0 %v2988_v13 }
 0x51b   :  { %823 = vmatprep.subr.bf16.mxu0 %v2995_v14 }
 0x51e   :  { %824 = vmatpush1.bf16.msra.mxu0 %v3007_v16 }
 0x51f   :  { %985 = vmatprep.subr.bf16.mxu0 %v2952_v7 }
 0x5e4   :  { %v683_v26 = vpop.f32.mrb[16].mxu0 }
 0x5e5   :  { %v690_v53 = vadd.f32 %v683_v26, %v3069_v31  ;;  %v685_v20 = vpop.f32.mrb[17].mxu0 }
 0x5e6   :  { %v691_v54 = vadd.f32 %v685_v20, %v3071_v34  ;;  %v687_v55 = vpop.f32.mrb[18].mxu0 }
 0x5e7   :  { %v688_v22 = vpop.f32.mrb[19].mxu0  ;;  %v2348_v33 = vmul.f32 -1.442695, %v690_v53 }
 0x5e8   :  { %2541 = vtanh.f32 %v691_v54  ;;  %v2349_v4 = vmul.f32 -1.442695, %v691_v54 }
 0x5e9   :  { %2543 = vpow2.f32 %v2348_v33 }
 0x5f2   :  { %v2542_v30 = vpop.eup %2541 }
 0x5f3   :  { %707 = vrot.lane.b32.xlu0 %v2542_v30, %s2810_s0  ;;  %v2544_v56 = vpop.eup %2543 }
 0x5f4   :  { %v698_v57 = vadd.f32 1.0, %v2544_v56 }
 0x5f6   :  { %2545 = vrcp.f32 %v698_v57 }
 0x600   :  { %v2546_v58 = vpop.eup %2545 }
 0x601   :  { %v705_v31 = vmul.f32 %v2546_v58, %v631_v32 }
 0x665   :  { %v708_v59 = vpop.permute.xlu0 %707 }
 0x666   :  { %v710_v1 = vmul.f32 %v2546_v58, %v708_v59 }
 0x668   :  { %712 = vrot.lane.b32.xlu1 %v710_v1, %s2810_s0 }
 0x6da   :  { %v713_v2 = vpop.permute.xlu1 %712 }
 0x6db   :  { %v715_v3 = vadd.f32 %v713_v2, %v705_v31 }
 0x6dd   :  { %2547 = vtanh.f32 %v715_v3 }
 0x6de   :  { %2549 = vpow2.f32 %v2349_v4 }
 0x6e7   :  { %v2548_v34 = vpop.eup %2547 }
 0x6e8   :  { %718 = vrot.lane.b32.xlu0 %v2548_v34, %s2810_s0  ;;  %v2550_v5 = vpop.eup %2549 }
 0x6e9   :  { %v699_v6 = vadd.f32 1.0, %v2550_v5 }
 0x6eb   :  { %2551 = vrcp.f32 %v699_v6 }
 0x6f5   :  { %v2552_v10 = vpop.eup %2551 }
 0x75a   :  { %v719_v15 = vpop.permute.xlu0 %718 }
 0x75b   :  { %v721_v17 = vmul.f32 %v2552_v10, %v719_v15 }
 0x75d   :  { %723 = vst.msk [vmem:[#allocation4 + $0x10] sm:$0xff] %vm478_vm1, %v721_v17  ;;  %v729_v19 = vpack.c.bf16 %v721_v17, %v721_v17 }
 0x75f   :  { %2350 = vmatmul.mubr.msk.bf16.vlgmr.msra.gmra.mrb[24].mxu1 %vm478_vm1, %v729_v19 }
 0x760   :  { %902 = vmatpush1.bf16.msra.mxu1 %v2957_v8  ;;  %933 = vmatprep.mubr.bf16.mxu1 %v2809_v0 }
 0x761   :  { %903 = vmatprep.subr.bf16.mxu1 %v2964_v9 }
 0x764   :  { %904 = vmatpush1.bf16.msra.mxu1 %v2976_v11 }
 0x765   :  { %905 = vmatprep.subr.bf16.mxu1 %v2981_v12 }
 0x768   :  { %906 = vmatpush1.bf16.msra.mxu1 %v2988_v13 }
 0x769   :  { %907 = vmatprep.subr.bf16.mxu1 %v2995_v14 }
 0x76c   :  { %908 = vmatpush1.bf16.msra.mxu1 %v3007_v16 }
 0x76d   :  { %1069 = vmatprep.subr.bf16.mxu1 %v2952_v7 }
 0x832   :  { %v767_v21 = vpop.f32.mrb[24].mxu1 }
 0x833   :  { %v774_v25 = vadd.f32 %v767_v21, %v3065_v23  ;;  %v769_v35 = vpop.f32.mrb[25].mxu1 }
 0x834   :  { %v775_v37 = vadd.f32 %v769_v35, %v3067_v28  ;;  %v771_v38 = vpop.f32.mrb[26].mxu1 }
 0x835   :  { %v772_v39 = vpop.f32.mrb[27].mxu1  ;;  %v2351_v41 = vmul.f32 -1.442695, %v774_v25 }
 0x836   :  { %2553 = vtanh.f32 %v775_v37  ;;  %v2352_v50 = vmul.f32 -1.442695, %v775_v37 }
 0x837   :  { %2555 = vpow2.f32 %v2351_v41 }
 0x840   :  { %v2554_v40 = vpop.eup %2553 }
 0x841   :  { %791 = vrot.lane.b32.xlu1 %v2554_v40, %s2810_s0  ;;  %v2556_v42 = vpop.eup %2555 }
 0x842   :  { %v782_v32 = vadd.f32 1.0, %v2556_v42 }
 0x844   :  { %2557 = vrcp.f32 %v782_v32 }
 0x84e   :  { %v2558_v44 = vpop.eup %2557 }
 0x84f   :  { %v789_v23 = vmul.f32 %v2558_v44, %v715_v3 }
 0x8b3   :  { %v792_v48 = vpop.permute.xlu1 %791 }
 0x8b4   :  { %v794_v7 = vmul.f32 %v2558_v44, %v792_v48 }
 0x8b6   :  { %796 = vrot.lane.b32.xlu0 %v794_v7, %s2810_s0 }
 0x928   :  { %v797_v49 = vpop.permute.xlu0 %796 }
 0x929   :  { %v799_v36 = vadd.f32 %v797_v49, %v789_v23 }
 0x92b   :  { %2559 = vtanh.f32 %v799_v36 }
 0x92c   :  { %2561 = vpow2.f32 %v2352_v50 }
 0x935   :  { %v2560_v28 = vpop.eup %2559 }
 0x936   :  { %802 = vrot.lane.b32.xlu1 %v2560_v28, %s2810_s0  ;;  %v2562_v51 = vpop.eup %2561  ;;  %v2477_v28 = vld [vmem:[%s3490_s5] ss:$8 sps:$4 sm:$0xff]  }
 0x937   :  { %v783_v52 = vadd.f32 1.0, %v2562_v51  ;;  %v2482_v51 = vld [vmem:[%s3490_s5 + $0x14] ss:$8 sps:$4 sm:$0xff]  }
 0x939   :  { %2563 = vrcp.f32 %v783_v52  ;;  %v2480_v52 = vld [vmem:[%s3490_s5 + $0x10] ss:$8 sps:$4 sm:$0xff]  }
 0x943   :  { %v2564_v24 = vpop.eup %2563 }
 0x9a8   :  { %v803_v26 = vpop.permute.xlu1 %802 }
 0x9a9   :  { %v805_v53 = vmul.f32 %v2564_v24, %v803_v26  ;;  %v2485_v24 = vld [vmem:[%s3490_s5 + $0x24] ss:$8 sps:$4 sm:$0xff]   ;;  %v2483_v26 = vld [vmem:[%s3490_s5 + $0x20] ss:$8 sps:$4 sm:$0xff]  }
 0x9ab   :  { %807 = vst.msk [vmem:[#allocation4 + $0x18] sm:$0xff] %vm478_vm1, %v805_v53  ;;  %v813_v20 = vpack.c.bf16 %v805_v53, %v805_v53  ;;  %v2488_v53 = vld [vmem:[%s3490_s5 + $0x34] ss:$8 sps:$4 sm:$0xff]  }
 0x9ad   :  { %2353 = vmatmul.mubr.msk.bf16.vlgmr.msra.gmra.mrb[20].mxu0 %vm478_vm1, %v813_v20  ;;  %v2486_v20 = vld [vmem:[%s3490_s5 + $0x30] ss:$8 sps:$4 sm:$0xff]  }
 0x9ae   :  { %986 = vmatpush1.bf16.msra.mxu0 %v2957_v8  ;;  %1017 = vmatprep.mubr.bf16.mxu0 %v2809_v0 }
 0x9af   :  { %987 = vmatprep.subr.bf16.mxu0 %v2964_v9 }
 0x9b2   :  { %988 = vmatpush1.bf16.msra.mxu0 %v2976_v11 }
 0x9b3   :  { %989 = vmatprep.subr.bf16.mxu0 %v2981_v12 }
 0x9b6   :  { %990 = vmatpush1.bf16.msra.mxu0 %v2988_v13 }
 0x9b7   :  { %991 = vmatprep.subr.bf16.mxu0 %v2995_v14 }
 0x9ba   :  { %992 = vmatpush1.bf16.msra.mxu0 %v3007_v16 }
 0xa80   :  { %v851_v54 = vpop.f32.mrb[20].mxu0 }
 0xa81   :  { %v858_v55 = vadd.f32 %v851_v54, %v3057_v60  ;;  %v853_v22 = vpop.f32.mrb[21].mxu0  ;;  %v1145_v54 = vld [vmem:[#allocation4 + $0x8] sm:$0xff] }
 0xa82   :  { %v859_v30 = vadd.f32 %v853_v22, %v3061_v62  ;;  %v855_v33 = vpop.f32.mrb[22].mxu0 }
 0xa83   :  { %v856_v56 = vpop.f32.mrb[23].mxu0  ;;  %v2354_v58 = vmul.f32 -1.442695, %v858_v55  ;;  %v1144_v55 = vld [vmem:[#allocation4] sm:$0xff]  ;;  %v1146_v33 = vld [vmem:[#allocation4 + $0x10] sm:$0xff] }
 0xa84   :  { %2565 = vtanh.f32 %v859_v30  ;;  %v2355_v5 = vmul.f32 -1.442695, %v859_v30  ;;  %v3184_v22 = vpack.c.bf16 %v1145_v54, %v1144_v55  ;;  %v1147_v30 = vld [vmem:[#allocation4 + $0x18] sm:$0xff] }
 0xa85   :  { %2567 = vpow2.f32 %v2354_v58  ;;  %v3189_v56 = vpack.c.bf16 %v1147_v30, %v1146_v33 }
 0xa8e   :  { %v2566_v57 = vpop.eup %2565 }
 0xa8f   :  { %875 = vrot.lane.b32.xlu0 %v2566_v57, %s2810_s0  ;;  %v2568_v59 = vpop.eup %2567 }
 0xa90   :  { %v866_v1 = vadd.f32 1.0, %v2568_v59 }
 0xa92   :  { %2569 = vrcp.f32 %v866_v1 }
 0xa9c   :  { %v2570_v31 = vpop.eup %2569 }
 0xa9d   :  { %v873_v60 = vmul.f32 %v2570_v31, %v799_v36 }
 0xb01   :  { %v876_v2 = vpop.permute.xlu0 %875 }
 0xb02   :  { %v878_v3 = vmul.f32 %v2570_v31, %v876_v2 }
 0xb04   :  { %880 = vrot.lane.b32.xlu1 %v878_v3, %s2810_s0 }
 0xb76   :  { %v881_v34 = vpop.permute.xlu1 %880 }
 0xb77   :  { %v883_v4 = vadd.f32 %v881_v34, %v873_v60 }
 0xb79   :  { %2571 = vtanh.f32 %v883_v4 }
 0xb7a   :  { %2573 = vpow2.f32 %v2355_v5 }
 0xb83   :  { %v2572_v62 = vpop.eup %2571 }
 0xb84   :  { %886 = vrot.lane.b32.xlu0 %v2572_v62, %s2810_s0  ;;  %v2574_v6 = vpop.eup %2573 }
 0xb85   :  { %v867_v10 = vadd.f32 1.0, %v2574_v6 }
 0xb87   :  { %2575 = vrcp.f32 %v867_v10 }
 0xb91   :  { %v2576_v15 = vpop.eup %2575 }
 0xbf6   :  { %v887_v17 = vpop.permute.xlu0 %886 }
 0xbf7   :  { %v889_v19 = vmul.f32 %v2576_v15, %v887_v17 }
 0xbf9   :  { %891 = vst.msk [vmem:[#allocation4 + $0x20] sm:$0xff] %vm478_vm1, %v889_v19  ;;  %v897_v21 = vpack.c.bf16 %v889_v19, %v889_v19 }
 0xbfb   :  { %2356 = vmatmul.mubr.msk.bf16.vlgmr.msra.gmra.mrb[28].mxu1 %vm478_vm1, %v897_v21 }
 0xbfc   :  { %1070 = vmatpush1.bf16.msra.mxu1 %v2957_v8  ;;  %1101 = vmatprep.mubr.bf16.mxu1 %v2809_v0 }
 0xbfd   :  { %1071 = vmatprep.subr.bf16.mxu1 %v2964_v9 }
 0xc00   :  { %1072 = vmatpush1.bf16.msra.mxu1 %v2976_v11  ;;  %v1148_v58 = vld [vmem:[#allocation4 + $0x20] sm:$0xff] }
 0xc01   :  { %1073 = vmatprep.subr.bf16.mxu1 %v2981_v12 }
 0xc04   :  { %1074 = vmatpush1.bf16.msra.mxu1 %v2988_v13 }
 0xc05   :  { %1075 = vmatprep.subr.bf16.mxu1 %v2995_v14 }
 0xc08   :  { %1076 = vmatpush1.bf16.msra.mxu1 %v3007_v16 }
 0xcce   :  { %v935_v25 = vpop.f32.mrb[28].mxu1 }
 0xccf   :  { %v942_v35 = vadd.f32 %v935_v25, %v3059_v61  ;;  %v937_v37 = vpop.f32.mrb[29].mxu1 }
 0xcd0   :  { %v943_v8 = vadd.f32 %v937_v37, %v3063_v63  ;;  %v939_v38 = vpop.f32.mrb[30].mxu1  ;;  %v2479_v63 = vld [vmem:[%s3490_s5 + $0x4] ss:$8 sps:$4 sm:$0xff]  }
 0xcd1   :  { %v940_v39 = vpop.f32.mrb[31].mxu1  ;;  %v2357_v11 = vmul.f32 -1.442695, %v942_v35  ;;  %1216 = vmatprep.subr.bf16.mxu0 %v2479_v63 }
 0xcd2   :  { %2577 = vtanh.f32 %v943_v8  ;;  %v2358_v44 = vmul.f32 -1.442695, %v943_v8 }
 0xcd3   :  { %2579 = vpow2.f32 %v2357_v11 }
 0xcdc   :  { %v2578_v9 = vpop.eup %2577 }
 0xcdd   :  { %959 = vrot.lane.b32.xlu1 %v2578_v9, %s2810_s0  ;;  %v2580_v12 = vpop.eup %2579 }
 0xcde   :  { %v950_v13 = vadd.f32 1.0, %v2580_v12 }
 0xce0   :  { %2581 = vrcp.f32 %v950_v13 }
 0xcea   :  { %v2582_v14 = vpop.eup %2581 }
 0xceb   :  { %v957_v61 = vmul.f32 %v2582_v14, %v883_v4 }
 0xd4f   :  { %v960_v40 = vpop.permute.xlu1 %959 }
 0xd50   :  { %v962_v16 = vmul.f32 %v2582_v14, %v960_v40  ;;  %v2491_v40 = vld [vmem:[#allocation7 + $0x4] ss:$8 sps:$4 sm:$0xff]  }
 0xd51   :  { %1353 = vmatprep.subr.bf16.mxu1 %v2491_v40 }
 0xd52   :  { %964 = vrot.lane.b32.xlu0 %v962_v16, %s2810_s0 }
 0xdc4   :  { %v965_v41 = vpop.permute.xlu0 %964 }
 0xdc5   :  { %v3153_v42 = vadd.f32 %v965_v41, %v957_v61 }
 0xdc7   :  { %2583 = vtanh.f32 %v3153_v42 }
 0xdc8   :  { %2585 = vpow2.f32 %v2358_v44 }
 0xdd1   :  { %v2584_v32 = vpop.eup %2583 }
 0xdd2   :  { %970 = vrot.lane.b32.xlu1 %v2584_v32, %s2810_s0  ;;  %v2586_v48 = vpop.eup %2585 }
 0xdd3   :  { %v951_v7 = vadd.f32 1.0, %v2586_v48 }
 0xdd5   :  { %2587 = vrcp.f32 %v951_v7  ;;  %v2489_v7 = vld [vmem:[#allocation7] ss:$8 sps:$4 sm:$0xff]  }
 0xddf   :  { %v2588_v23 = vpop.eup %2587 }
 0xe44   :  { %v971_v49 = vpop.permute.xlu1 %970 }
 0xe45   :  { %v973_v36 = vmul.f32 %v2588_v23, %v971_v49  ;;  %v2494_v23 = vld [vmem:[#allocation7 + $0x14] ss:$8 sps:$4 sm:$0xff]   ;;  %v2492_v49 = vld [vmem:[#allocation7 + $0x10] ss:$8 sps:$4 sm:$0xff]  }
 0xe47   :  { %975 = vst.msk [vmem:[#allocation4 + $0x28] sm:$0xff] %vm478_vm1, %v973_v36  ;;  %v981_v50 = vpack.c.bf16 %v973_v36, %v973_v36  ;;  %v2497_v36 = vld [vmem:[#allocation7 + $0x24] ss:$8 sps:$4 sm:$0xff]  }
 0xe49   :  { %2359 = vmatmul.mubr.msk.bf16.vlgmr.msra.gmra.mrb[24].mxu0 %vm478_vm1, %v981_v50  ;;  %v2500_v50 = vld [vmem:[#allocation7 + $0x34] ss:$8 sps:$4 sm:$0xff]  }
 0xe4a   :  { %1217 = vmatpush1.bf16.msra.mxu0 %v2477_v28  ;;  %1248 = vmatprep.mubr.bf16.mxu0 %v2809_v0  ;;  %v2495_v28 = vld [vmem:[#allocation7 + $0x20] ss:$8 sps:$4 sm:$0xff]  }
 0xe4b   :  { %1218 = vmatprep.subr.bf16.mxu0 %v2482_v51  ;;  %v2498_v51 = vld [vmem:[#allocation7 + $0x30] ss:$8 sps:$4 sm:$0xff]  }
 0xe4e   :  { %1219 = vmatpush1.bf16.msra.mxu0 %v2480_v52  ;;  %v1149_v57 = vld [vmem:[#allocation4 + $0x28] sm:$0xff] }
 0xe4f   :  { %1220 = vmatprep.subr.bf16.mxu0 %v2485_v24  ;;  %v3194_v59 = vpack.c.bf16 %v1149_v57, %v1148_v58 }
 0xe52   :  { %1221 = vmatpush1.bf16.msra.mxu0 %v2483_v26 }
 0xe53   :  { %1222 = vmatprep.subr.bf16.mxu0 %v2488_v53 }
 0xe56   :  { %1223 = vmatpush1.bf16.msra.mxu0 %v2486_v20 }
 0xe59   :  { %2373 = vmatmul.mubr.msk.bf16.vlgmr.msra.gmra.mrb[28].mxu0 %vm478_vm1, %v3184_v22 }
 0xe5a   :  { %1258 = vmatprep.mubr.bf16.mxu0 %v2809_v0 }
 0xe61   :  { %2374 = vmatmul.mubr.msk.bf16.gmra.mrb[32].mxu0 %vm478_vm1, %v3189_v56 }
 0xe62   :  { %1268 = vmatprep.mubr.bf16.mxu0 %v2809_v0 }
 0xe69   :  { %2375 = vmatmul.mubr.msk.bf16.gmra.mrb[36].mxu0 %vm478_vm1, %v3194_v59 }
 0xe6a   :  { %1278 = vmatprep.mubr.bf16.mxu0 %v2809_v0 }
 0xf1c   :  { %v1019_v1 = vpop.f32.mrb[24].mxu0 }
 0xf1d   :  { %v1026_v31 = vadd.f32 %v1019_v1, %v3053_v46  ;;  %v1021_v2 = vpop.f32.mrb[25].mxu0 }
 0xf1e   :  { %v1027_v3 = vadd.f32 %v1021_v2, %v3055_v47  ;;  %v1023_v60 = vpop.f32.mrb[26].mxu0 }
 0xf1f   :  { %v1024_v34 = vpop.f32.mrb[27].mxu0  ;;  %v2360_v37 = vmul.f32 -1.442695, %v1026_v31 }
 0xf20   :  { %2589 = vtanh.f32 %v1027_v3  ;;  %v2361_v61 = vmul.f32 -1.442695, %v1027_v3 }
 0xf21   :  { %2591 = vpow2.f32 %v2360_v37 }
 0xf2a   :  { %v2590_v4 = vpop.eup %2589 }
 0xf2b   :  { %1043 = vrot.lane.b32.xlu0 %v2590_v4, %s2810_s0  ;;  %v2592_v8 = vpop.eup %2591 }
 0xf2c   :  { %v3202_v62 = vpop.f32.mrb[28].mxu0  ;;  %v1034_v38 = vadd.f32 1.0, %v2592_v8 }
 0xf2d   :  { %v3204_v5 = vpop.f32.mrb[29].mxu0 }
 0xf2e   :  { %v3206_v6 = vpop.f32.mrb[30].mxu0  ;;  %2593 = vrcp.f32 %v1034_v38 }
 0xf2f   :  { %v3208_v10 = vpop.f32.mrb[31].mxu0 }
 0xf34   :  { %v3210_v15 = vpop.f32.mrb[32].mxu0 }
 0xf35   :  { %v3212_v46 = vpop.f32.mrb[33].mxu0 }
 0xf36   :  { %v3214_v17 = vpop.f32.mrb[34].mxu0 }
 0xf37   :  { %v3216_v47 = vpop.f32.mrb[35].mxu0 }
 0xf38   :  { %v2594_v39 = vpop.eup %2593 }
 0xf39   :  { %v1041_v12 = vmul.f32 %v2594_v39, %v3153_v42 }
 0xf3c   :  { %v3218_v19 = vpop.f32.mrb[36].mxu0 }
 0xf3d   :  { %v3220_v21 = vpop.f32.mrb[37].mxu0 }
 0xf3e   :  { %v3222_v25 = vpop.f32.mrb[38].mxu0 }
 0xf3f   :  { %v3224_v35 = vpop.f32.mrb[39].mxu0 }
 0xf9d   :  { %v1044_v9 = vpop.permute.xlu0 %1043 }
 0xf9e   :  { %v1046_v11 = vmul.f32 %v2594_v39, %v1044_v9 }
 0xfa0   :  { %1048 = vrot.lane.b32.xlu1 %v1046_v11, %s2810_s0  ;;  %v3285_v11 = vld [vmem:[#allocation9] ss:$8 sps:$4 sm:$0xff]  }
0x1012   :  { %v1049_v13 = vpop.permute.xlu1 %1048 }
0x1013   :  { %v3228_v14 = vadd.f32 %v1049_v13, %v1041_v12 }
0x1015   :  { %2595 = vtanh.f32 %v3228_v14 }
0x1016   :  { %2597 = vpow2.f32 %v2361_v61  ;;  %v3302_v61 = vld [vmem:[#allocation9 + $0x20] ss:$8 sps:$4 sm:$0xff]  }
0x101f   :  { %v2596_v16 = vpop.eup %2595 }
0x1020   :  { %1054 = vrot.lane.b32.xlu0 %v2596_v16, %s2810_s0  ;;  %v2598_v41 = vpop.eup %2597  ;;  %v3300_v16 = vld [vmem:[#allocation9 + $0x24] ss:$8 sps:$4 sm:$0xff]  }
0x1021   :  { %v1035_v63 = vadd.f32 1.0, %v2598_v41 }
0x1023   :  { %2599 = vrcp.f32 %v1035_v63  ;;  %v3308_v63 = vld [vmem:[#allocation9 + $0x34] ss:$8 sps:$4 sm:$0xff]  }
0x102d   :  { %v2600_v32 = vpop.eup %2599 }
0x1092   :  { %v1055_v44 = vpop.permute.xlu0 %1054 }
0x1093   :  { %v1057_v48 = vmul.f32 %v2600_v32, %v1055_v44  ;;  %v3310_v32 = vld [vmem:[#allocation9 + $0x30] ss:$8 sps:$4 sm:$0xff]  }
0x1095   :  { %1059 = vst.msk [vmem:[#allocation4 + $0x30] sm:$0xff] %vm478_vm1, %v1057_v48  ;;  %v1065_v42 = vpack.c.bf16 %v1057_v48, %v1057_v48 }
0x1097   :  { %2362 = vmatmul.mubr.msk.bf16.vlgmr.msra.gmra.mrb[32].mxu1 %vm478_vm1, %v1065_v42 }
0x1098   :  { %1354 = vmatpush1.bf16.msra.mxu1 %v2489_v7  ;;  %1385 = vmatprep.mubr.bf16.mxu1 %v2809_v0 }
0x1099   :  { %1355 = vmatprep.subr.bf16.mxu1 %v2494_v23 }
0x109c   :  { %1356 = vmatpush1.bf16.msra.mxu1 %v2492_v49  ;;  %v1150_v49 = vld [vmem:[#allocation4 + $0x30] sm:$0xff] }
0x109d   :  { %1357 = vmatprep.subr.bf16.mxu1 %v2497_v36 }
0x10a0   :  { %1358 = vmatpush1.bf16.msra.mxu1 %v2495_v28 }
0x10a1   :  { %1359 = vmatprep.subr.bf16.mxu1 %v2500_v50 }
0x10a4   :  { %1360 = vmatpush1.bf16.msra.mxu1 %v2498_v51 }
0x10a7   :  { %2385 = vmatmul.mubr.msk.bf16.vlgmr.msra.gmra.mrb[36].mxu1 %vm478_vm1, %v3184_v22 }
0x10a8   :  { %1395 = vmatprep.mubr.bf16.mxu1 %v2809_v0 }
0x10af   :  { %2386 = vmatmul.mubr.msk.bf16.gmra.mrb[40].mxu1 %vm478_vm1, %v3189_v56 }
0x10b0   :  { %1405 = vmatprep.mubr.bf16.mxu1 %v2809_v0 }
0x10b7   :  { %2387 = vmatmul.mubr.msk.bf16.gmra.mrb[44].mxu1 %vm478_vm1, %v3194_v59 }
0x10b8   :  { %1415 = vmatprep.mubr.bf16.mxu1 %v2809_v0 }
0x116a   :  { %v1103_v52 = vpop.f32.mrb[32].mxu1 }
0x116b   :  { %v1110_v24 = vadd.f32 %v1103_v52, %v3049_v43  ;;  %v1105_v26 = vpop.f32.mrb[33].mxu1 }
0x116c   :  { %v3246_v53 = vadd.f32 %v1105_v26, %v3051_v45  ;;  %v1107_v20 = vpop.f32.mrb[34].mxu1 }
0x116d   :  { %v1108_v54 = vpop.f32.mrb[35].mxu1  ;;  %v2363_v8 = vmul.f32 -1.442695, %v1110_v24 }
0x116e   :  { %2601 = vtanh.f32 %v3246_v53 }
0x116f   :  { %2603 = vpow2.f32 %v2363_v8 }
0x1178   :  { %v2602_v55 = vpop.eup %2601 }
0x1179   :  { %1127 = vrot.lane.b32.xlu1 %v2602_v55, %s2810_s0 }
0x117a   :  { %v3250_v22 = vpop.f32.mrb[36].mxu1 }
0x117b   :  { %v3252_v30 = vpop.f32.mrb[37].mxu1 }
0x117c   :  { %v3254_v33 = vpop.f32.mrb[38].mxu1 }
0x117d   :  { %v3256_v56 = vpop.f32.mrb[39].mxu1 }
0x1182   :  { %v1397_v43 = vpop.f32.mrb[40].mxu1 }
0x1183   :  { %v3259_v57 = vadd.f32 %v1397_v43, %v3222_v25  ;;  %v1399_v45 = vpop.f32.mrb[41].mxu1 }
0x1184   :  { %v3262_v58 = vadd.f32 %v1399_v45, %v3224_v35  ;;  %v1401_v59 = vpop.f32.mrb[42].mxu1  ;;  %v1442_v45 = vld [vmem:[%s3493_s8] sm:$0x3] }
0x1185   :  { %v3265_v1 = vadd.f32 %v1401_v59, %v3218_v19  ;;  %v1403_v31 = vpop.f32.mrb[43].mxu1 }
0x1186   :  { %v3268_v2 = vadd.f32 %v1403_v31, %v3220_v21  ;;  %v2604_v21 = vpop.eup %2603 }
0x1187   :  { %v1118_v38 = vadd.f32 1.0, %v2604_v21 }
0x1189   :  { %2605 = vrcp.f32 %v1118_v38 }
0x118a   :  { %v1407_v3 = vpop.f32.mrb[44].mxu1 }
0x118b   :  { %v3271_v60 = vadd.f32 %v1407_v3, %v3214_v17  ;;  %v1409_v34 = vpop.f32.mrb[45].mxu1 }
0x118c   :  { %v3274_v4 = vadd.f32 %v1409_v34, %v3216_v47  ;;  %v1411_v25 = vpop.f32.mrb[46].mxu1  ;;  %v3283_v47 = vld [vmem:[#allocation9 + $0x4] ss:$8 sps:$4 sm:$0xff]   ;;  %v3360_v34 = vrot.slane %v1442_v45, %v341_v29 }
0x118d   :  { %v3277_v35 = vadd.f32 %v1411_v25, %v3210_v15  ;;  %v1413_v37 = vpop.f32.mrb[47].mxu1  ;;  %v3287_v15 = vld [vmem:[#allocation9 + $0x14] ss:$8 sps:$4 sm:$0xff]   ;;  %1584 = vmatprep.subr.bf16.mxu0 %v3283_v47  ;;  %1664 = vmatprep.subr.bf16.mxu1 %v3283_v47 }
0x118e   :  { %v3280_v19 = vadd.f32 %v1413_v37, %v3212_v46  ;;  %1585 = vmatpush1.bf16.msra.mxu0 %v3285_v11  ;;  %v3292_v46 = vld [vmem:[#allocation9 + $0x10] ss:$8 sps:$4 sm:$0xff]   ;;  %1665 = vmatpush1.bf16.msra.mxu1 %v3285_v11 }
0x118f   :  { %1586 = vmatprep.subr.bf16.mxu0 %v3287_v15  ;;  %1666 = vmatprep.subr.bf16.mxu1 %v3287_v15 }
0x1192   :  { %1587 = vmatpush1.bf16.msra.mxu0 %v3292_v46  ;;  %1667 = vmatpush1.bf16.msra.mxu1 %v3292_v46 }
0x1193   :  { %v2606_v39 = vpop.eup %2605  ;;  %1588 = vmatprep.subr.bf16.mxu0 %v3300_v16  ;;  %1668 = vmatprep.subr.bf16.mxu1 %v3300_v16 }
0x1194   :  { %v1125_v12 = vmul.f32 %v2606_v39, %v3228_v14  ;;  %v2364_v14 = vmul.f32 -1.442695, %v3246_v53 }
0x1196   :  { %1589 = vmatpush1.bf16.msra.mxu0 %v3302_v61  ;;  %1669 = vmatpush1.bf16.msra.mxu1 %v3302_v61 }
0x1197   :  { %1590 = vmatprep.subr.bf16.mxu0 %v3308_v63  ;;  %1670 = vmatprep.subr.bf16.mxu1 %v3308_v63 }
0x119a   :  { %1591 = vmatpush1.bf16.msra.mxu0 %v3310_v32  ;;  %1671 = vmatpush1.bf16.msra.mxu1 %v3310_v32 }
0x119b   :  { %1744 = vmatprep.subr.bf16.mxu0 %v3283_v47  ;;  %1824 = vmatprep.subr.bf16.mxu1 %v3283_v47 }
0x11eb   :  { %v1128_v17 = vpop.permute.xlu1 %1127 }
0x11ec   :  { %v1130_v9 = vmul.f32 %v2606_v39, %v1128_v17 }
0x11ee   :  { %1132 = vrot.lane.b32.xlu0 %v1130_v9, %s2810_s0 }
0x1260   :  { %v1133_v13 = vpop.permute.xlu0 %1132 }
0x1261   :  { %v1135_v40 = vadd.f32 %v1133_v13, %v1125_v12 }
0x1263   :  { %2607 = vtanh.f32 %v1135_v40 }
0x1264   :  { %2609 = vpow2.f32 %v2364_v14 }
0x126d   :  { %v2608_v41 = vpop.eup %2607 }
0x126e   :  { %1138 = vrot.lane.b32.xlu1 %v2608_v41, %s2810_s0  ;;  %v2610_v44 = vpop.eup %2609 }
0x126f   :  { %v1119_v48 = vadd.f32 1.0, %v2610_v44 }
0x1271   :  { %2611 = vrcp.f32 %v1119_v48 }
0x127b   :  { %v2612_v7 = vpop.eup %2611 }
0x12e0   :  { %v1139_v42 = vpop.permute.xlu1 %1138 }
0x12e1   :  { %v1141_v23 = vmul.f32 %v2612_v7, %v1139_v42 }
0x12e3   :  { %1143 = vst.msk [vmem:[#allocation4 + $0x38] sm:$0xff] %vm478_vm1, %v1141_v23 }
0x12ea   :  { %v1151_v36 = vld [vmem:[#allocation4 + $0x38] sm:$0xff] }
0x12eb   :  { %v1155_v28 = vpack.c.bf16 %v1151_v36, %v1150_v49 }
0x12ed   :  { %2376 = vmatmul.mubr.msk.bf16.gmra.mrb[40].mxu0 %vm478_vm1, %v1155_v28  ;;  %2388 = vmatmul.mubr.msk.bf16.gmra.mrb[48].mxu1 %vm478_vm1, %v1155_v28 }
0x12ee   :  { %1616 = vmatprep.mubr.bf16.mxu0 %v2809_v0  ;;  %1696 = vmatprep.mubr.bf16.mxu1 %v2809_v0 }
0x12f5   :  { %1617 = vmatmul.mubr.bf16.vlgmr.msra.gmra.mrb[44].mxu0 %v2809_v0 }
0x12f6   :  { %1745 = vmatpush1.bf16.msra.mxu0 %v3285_v11  ;;  %1776 = vmatprep.mubr.bf16.mxu0 %v2809_v0 }
0x12f7   :  { %1746 = vmatprep.subr.bf16.mxu0 %v3287_v15 }
0x12fa   :  { %1747 = vmatpush1.bf16.msra.mxu0 %v3292_v46 }
0x12fb   :  { %1748 = vmatprep.subr.bf16.mxu0 %v3300_v16 }
0x12fe   :  { %1749 = vmatpush1.bf16.msra.mxu0 %v3302_v61 }
0x12ff   :  { %1750 = vmatprep.subr.bf16.mxu0 %v3308_v63 }
0x1302   :  { %1751 = vmatpush1.bf16.msra.mxu0 %v3310_v32 }
0x1303   :  { %1904 = vmatprep.subr.bf16.mxu0 %v3283_v47 }
0x13c0   :  { %v1280_v50 = vpop.f32.mrb[40].mxu0  ;;  %v1417_v51 = vpop.f32.mrb[48].mxu1 }
0x13c1   :  { %v3336_v52 = vadd.f32 %v3254_v33, %v1280_v50  ;;  %v1482_v24 = vadd.f32 %v1417_v51, %v3206_v6  ;;  %v1282_v26 = vpop.f32.mrb[41].mxu0  ;;  %v1419_v53 = vpop.f32.mrb[49].mxu1 }
0x13c2   :  { %v3340_v20 = vadd.f32 %v3256_v56, %v1282_v26  ;;  %v1483_v54 = vadd.f32 %v1419_v53, %v3208_v10  ;;  %v1284_v55 = vpop.f32.mrb[42].mxu0  ;;  %v1421_v43 = vpop.f32.mrb[50].mxu1  ;;  %v3356_v10 = vrot.slane %v1442_v45, %v337_v27 }
0x13c3   :  { %v3347_v59 = vadd.f32 %v3250_v22, %v1284_v55  ;;  %v1462_v33 = vadd.f32 %v1421_v43, %v3202_v62  ;;  %v1286_v31 = vpop.f32.mrb[43].mxu0  ;;  %v1423_v6 = vpop.f32.mrb[51].mxu1 }
0x13c4   :  { %v3351_v3 = vadd.f32 %v3252_v30, %v1286_v31  ;;  %v1463_v56 = vadd.f32 %v1423_v6, %v3204_v5  ;;  %v1484_v36 = vadd.f32 %v1482_v24, %v3356_v10  ;;  %v1485_v50 = vadd.f32 %v1483_v54, %v3360_v34 }
0x13c5   :  { %v1464_v22 = vadd.f32 %v1462_v33, %v3356_v10 }
0x13c6   :  { %v1465_v62 = vadd.f32 %v1463_v56, %v3360_v34 }
0x13c8   :  { %v1618_v25 = vpop.f32.mrb[44].mxu0 }
0x13c9   :  { %v1625_v37 = vadd.f32 %v1618_v25, %v1464_v22  ;;  %v1620_v8 = vpop.f32.mrb[45].mxu0 }
0x13ca   :  { %v1626_v21 = vadd.f32 %v1620_v8, %v1465_v62  ;;  %v1622_v30 = vpop.f32.mrb[46].mxu0 }
0x13cb   :  { %v1623_v38 = vpop.f32.mrb[47].mxu0  ;;  %v2397_v27 = vmul.f32 -1.442695, %v1625_v37 }
0x13cc   :  { %2613 = vtanh.f32 %v1626_v21  ;;  %v2398_v14 = vmul.f32 -1.442695, %v1626_v21 }
0x13cd   :  { %2615 = vpow2.f32 %v2397_v27 }
0x13d6   :  { %v2614_v5 = vpop.eup %2613 }
0x13d7   :  { %1642 = vrot.lane.b32.xlu0 %v2614_v5, %s2810_s0  ;;  %v2616_v39 = vpop.eup %2615 }
0x13d8   :  { %v1633_v18 = vadd.f32 1.0, %v2616_v39 }
0x13da   :  { %2617 = vrcp.f32 %v1633_v18  ;;  %v1504_v18 = vadd.f32 %v3277_v35, %v3356_v10 }
0x13e4   :  { %v2618_v29 = vpop.eup %2617 }
0x13e5   :  { %v1640_v12 = vmul.f32 0.0, %v2618_v29 }
0x1449   :  { %v1643_v17 = vpop.permute.xlu0 %1642 }
0x144a   :  { %v1645_v9 = vmul.f32 %v2618_v29, %v1643_v17  ;;  %v1505_v17 = vadd.f32 %v3280_v19, %v3360_v34 }
0x144c   :  { %1647 = vrot.lane.b32.xlu1 %v1645_v9, %s2810_s0 }
0x14be   :  { %v1648_v13 = vpop.permute.xlu1 %1647 }
0x14bf   :  { %v1650_v40 = vadd.f32 %v1648_v13, %v1640_v12 }
0x14c1   :  { %2619 = vtanh.f32 %v1650_v40 }
0x14c2   :  { %2621 = vpow2.f32 %v2398_v14 }
0x14cb   :  { %v2620_v41 = vpop.eup %2619 }
0x14cc   :  { %1653 = vrot.lane.b32.xlu0 %v2620_v41, %s2810_s0  ;;  %v2622_v44 = vpop.eup %2621 }
0x14cd   :  { %v1634_v48 = vadd.f32 1.0, %v2622_v44 }
0x14cf   :  { %2623 = vrcp.f32 %v1634_v48 }
0x14d9   :  { %v2624_v7 = vpop.eup %2623 }
0x153e   :  { %v1654_v42 = vpop.permute.xlu0 %1653 }
0x153f   :  { %v3367_v23 = vmul.f32 %v2624_v7, %v1654_v42 }
0x1541   :  { %v1660_v49 = vpack.c.bf16 %v3367_v23, %v3367_v23 }
0x1543   :  { %2399 = vmatmul.mubr.msk.bf16.vlgmr.msra.gmra.mrb[52].mxu1 %vm478_vm1, %v1660_v49 }
0x1544   :  { %1825 = vmatpush1.bf16.msra.mxu1 %v3285_v11  ;;  %1856 = vmatprep.mubr.bf16.mxu1 %v2809_v0 }
0x1545   :  { %1826 = vmatprep.subr.bf16.mxu1 %v3287_v15 }
0x1548   :  { %1827 = vmatpush1.bf16.msra.mxu1 %v3292_v46 }
0x1549   :  { %1828 = vmatprep.subr.bf16.mxu1 %v3300_v16 }
0x154c   :  { %1829 = vmatpush1.bf16.msra.mxu1 %v3302_v61 }
0x154d   :  { %1830 = vmatprep.subr.bf16.mxu1 %v3308_v63 }
0x1550   :  { %1831 = vmatpush1.bf16.msra.mxu1 %v3310_v32 }
0x1551   :  { %1984 = vmatprep.subr.bf16.mxu1 %v3283_v47 }
0x1616   :  { %v1698_v28 = vpop.f32.mrb[52].mxu1 }
0x1617   :  { %v1705_v51 = vadd.f32 %v1698_v28, %v1484_v36  ;;  %v1700_v26 = vpop.f32.mrb[53].mxu1 }
0x1618   :  { %v1706_v53 = vadd.f32 %v1700_v26, %v1485_v50  ;;  %v1702_v55 = vpop.f32.mrb[54].mxu1 }
0x1619   :  { %v1703_v43 = vpop.f32.mrb[55].mxu1  ;;  %v2400_v33 = vmul.f32 -1.442695, %v1705_v51 }
0x161a   :  { %2625 = vtanh.f32 %v1706_v53  ;;  %v2401_v8 = vmul.f32 -1.442695, %v1706_v53 }
0x161b   :  { %2627 = vpow2.f32 %v2400_v33 }
0x1624   :  { %v2626_v45 = vpop.eup %2625 }
0x1625   :  { %1722 = vrot.lane.b32.xlu1 %v2626_v45, %s2810_s0  ;;  %v2628_v31 = vpop.eup %2627 }
0x1626   :  { %v1713_v6 = vadd.f32 1.0, %v2628_v31 }
0x1628   :  { %2629 = vrcp.f32 %v1713_v6 }
0x1632   :  { %v2630_v56 = vpop.eup %2629 }
0x1633   :  { %v1720_v54 = vmul.f32 %v2630_v56, %v1650_v40 }
0x1697   :  { %v1723_v22 = vpop.permute.xlu1 %1722 }
0x1698   :  { %v1725_v24 = vmul.f32 %v2630_v56, %v1723_v22  ;;  %v1525_v22 = vadd.f32 %v3274_v4, %v3360_v34 }
0x169a   :  { %1727 = vrot.lane.b32.xlu0 %v1725_v24, %s2810_s0 }
0x170c   :  { %v1728_v25 = vpop.permute.xlu0 %1727 }
0x170d   :  { %v1730_v62 = vadd.f32 %v1728_v25, %v1720_v54 }
0x170f   :  { %2631 = vtanh.f32 %v1730_v62 }
0x1710   :  { %2633 = vpow2.f32 %v2401_v8 }
0x1719   :  { %v2632_v37 = vpop.eup %2631 }
0x171a   :  { %1733 = vrot.lane.b32.xlu1 %v2632_v37, %s2810_s0  ;;  %v2634_v21 = vpop.eup %2633 }
0x171b   :  { %v1714_v30 = vadd.f32 1.0, %v2634_v21 }
0x171d   :  { %2635 = vrcp.f32 %v1714_v30 }
0x1727   :  { %v2636_v38 = vpop.eup %2635 }
0x178c   :  { %v1734_v5 = vpop.permute.xlu1 %1733 }
0x178d   :  { %v1736_v27 = vmul.f32 %v2636_v38, %v1734_v5 }
0x178f   :  { %v1740_v39 = vpack.c.bf16 %v1736_v27, %v1736_v27  ;;  %v1737_v45 = vadd.f32 %v1736_v27, %v3367_v23  ;;  %v1524_v23 = vadd.f32 %v3271_v60, %v3356_v10 }
0x1791   :  { %2402 = vmatmul.mubr.msk.bf16.vlgmr.msra.gmra.mrb[48].mxu0 %vm478_vm1, %v1740_v39 }
0x1792   :  { %1905 = vmatpush1.bf16.msra.mxu0 %v3285_v11  ;;  %1936 = vmatprep.mubr.bf16.mxu0 %v2809_v0 }
0x1793   :  { %1906 = vmatprep.subr.bf16.mxu0 %v3287_v15 }
0x1796   :  { %1907 = vmatpush1.bf16.msra.mxu0 %v3292_v46 }
0x1797   :  { %1908 = vmatprep.subr.bf16.mxu0 %v3300_v16 }
0x179a   :  { %1909 = vmatpush1.bf16.msra.mxu0 %v3302_v61 }
0x179b   :  { %1910 = vmatprep.subr.bf16.mxu0 %v3308_v63 }
0x179e   :  { %1911 = vmatpush1.bf16.msra.mxu0 %v3310_v32 }
0x179f   :  { %2064 = vmatprep.subr.bf16.mxu0 %v3283_v47 }
0x1864   :  { %v1778_v29 = vpop.f32.mrb[48].mxu0 }
0x1865   :  { %v1785_v9 = vadd.f32 %v1778_v29, %v1504_v18  ;;  %v1780_v12 = vpop.f32.mrb[49].mxu0 }
0x1866   :  { %v1786_v13 = vadd.f32 %v1780_v12, %v1505_v17  ;;  %v1782_v40 = vpop.f32.mrb[50].mxu0 }
0x1867   :  { %v1783_v41 = vpop.f32.mrb[51].mxu0  ;;  %v2403_v44 = vmul.f32 -1.442695, %v1785_v9 }
0x1868   :  { %2637 = vtanh.f32 %v1786_v13  ;;  %v2404_v51 = vmul.f32 -1.442695, %v1786_v13 }
0x1869   :  { %2639 = vpow2.f32 %v2403_v44  ;;  %v1530_v44 = vadd.f32 %v3265_v1, %v3356_v10 }
0x1872   :  { %v2638_v14 = vpop.eup %2637 }
0x1873   :  { %1802 = vrot.lane.b32.xlu0 %v2638_v14, %s2810_s0  ;;  %v2640_v48 = vpop.eup %2639 }
0x1874   :  { %v1793_v7 = vadd.f32 1.0, %v2640_v48 }
0x1876   :  { %2641 = vrcp.f32 %v1793_v7  ;;  %v1531_v7 = vadd.f32 %v3268_v2, %v3360_v34 }
0x1880   :  { %v2642_v42 = vpop.eup %2641 }
0x1881   :  { %v1800_v19 = vmul.f32 %v2642_v42, %v1730_v62 }
0x18e5   :  { %v1803_v35 = vpop.permute.xlu0 %1802 }
0x18e6   :  { %v1805_v49 = vmul.f32 %v2642_v42, %v1803_v35 }
0x18e8   :  { %1807 = vrot.lane.b32.xlu1 %v1805_v49, %s2810_s0 }
0x195a   :  { %v1808_v36 = vpop.permute.xlu1 %1807 }
0x195b   :  { %v1810_v28 = vadd.f32 %v1808_v36, %v1800_v19 }
0x195d   :  { %2643 = vtanh.f32 %v1810_v28 }
0x195e   :  { %2645 = vpow2.f32 %v2404_v51 }
0x1967   :  { %v2644_v50 = vpop.eup %2643 }
0x1968   :  { %1813 = vrot.lane.b32.xlu0 %v2644_v50, %s2810_s0  ;;  %v2646_v26 = vpop.eup %2645 }
0x1969   :  { %v1794_v53 = vadd.f32 1.0, %v2646_v26 }
0x196b   :  { %2647 = vrcp.f32 %v1794_v53 }
0x1975   :  { %v2648_v55 = vpop.eup %2647 }
0x19da   :  { %v1814_v43 = vpop.permute.xlu0 %1813 }
0x19db   :  { %v1816_v33 = vmul.f32 %v2648_v55, %v1814_v43 }
0x19dd   :  { %v1817_v31 = vadd.f32 %v1816_v33, %v1737_v45  ;;  %v1820_v6 = vpack.c.bf16 %v1816_v33, %v1816_v33 }
0x19df   :  { %2405 = vmatmul.mubr.msk.bf16.vlgmr.msra.gmra.mrb[56].mxu1 %vm478_vm1, %v1820_v6 }
0x19e0   :  { %1985 = vmatpush1.bf16.msra.mxu1 %v3285_v11  ;;  %2016 = vmatprep.mubr.bf16.mxu1 %v2809_v0 }
0x19e1   :  { %1986 = vmatprep.subr.bf16.mxu1 %v3287_v15 }
0x19e4   :  { %1987 = vmatpush1.bf16.msra.mxu1 %v3292_v46 }
0x19e5   :  { %1988 = vmatprep.subr.bf16.mxu1 %v3300_v16 }
0x19e8   :  { %1989 = vmatpush1.bf16.msra.mxu1 %v3302_v61 }
0x19e9   :  { %1990 = vmatprep.subr.bf16.mxu1 %v3308_v63 }
0x19ec   :  { %1991 = vmatpush1.bf16.msra.mxu1 %v3310_v32 }
0x19ed   :  { %2144 = vmatprep.subr.bf16.mxu1 %v3283_v47 }
0x1ab2   :  { %v1858_v56 = vpop.f32.mrb[56].mxu1 }
0x1ab3   :  { %v1865_v24 = vadd.f32 %v1858_v56, %v1524_v23  ;;  %v1860_v54 = vpop.f32.mrb[57].mxu1 }
0x1ab4   :  { %v1866_v25 = vadd.f32 %v1860_v54, %v1525_v22  ;;  %v1862_v62 = vpop.f32.mrb[58].mxu1 }
0x1ab5   :  { %v1863_v37 = vpop.f32.mrb[59].mxu1  ;;  %v2406_v21 = vmul.f32 -1.442695, %v1865_v24  ;;  %v1510_v62 = vadd.f32 %v3259_v57, %v3356_v10 }
0x1ab6   :  { %2649 = vtanh.f32 %v1866_v25  ;;  %v2407_v29 = vmul.f32 -1.442695, %v1866_v25 }
0x1ab7   :  { %2651 = vpow2.f32 %v2406_v21 }
0x1ac0   :  { %v2650_v8 = vpop.eup %2649 }
0x1ac1   :  { %1882 = vrot.lane.b32.xlu1 %v2650_v8, %s2810_s0  ;;  %v2652_v30 = vpop.eup %2651 }
0x1ac2   :  { %v1873_v47 = vadd.f32 1.0, %v2652_v30 }
0x1ac4   :  { %2653 = vrcp.f32 %v1873_v47 }
0x1ace   :  { %v2654_v38 = vpop.eup %2653 }
0x1acf   :  { %v1880_v4 = vmul.f32 %v2654_v38, %v1810_v28 }
0x1b33   :  { %v1883_v60 = vpop.permute.xlu1 %1882 }
0x1b34   :  { %v1885_v5 = vmul.f32 %v2654_v38, %v1883_v60 }
0x1b36   :  { %1887 = vrot.lane.b32.xlu0 %v1885_v5, %s2810_s0 }
0x1ba8   :  { %v1888_v27 = vpop.permute.xlu0 %1887 }
0x1ba9   :  { %v1890_v39 = vadd.f32 %v1888_v27, %v1880_v4 }
0x1bab   :  { %2655 = vtanh.f32 %v1890_v39 }
0x1bac   :  { %2657 = vpow2.f32 %v2407_v29 }
0x1bb5   :  { %v2656_v18 = vpop.eup %2655 }
0x1bb6   :  { %1893 = vrot.lane.b32.xlu1 %v2656_v18, %s2810_s0  ;;  %v2658_v17 = vpop.eup %2657 }
0x1bb7   :  { %v1874_v9 = vadd.f32 1.0, %v2658_v17 }
0x1bb9   :  { %2659 = vrcp.f32 %v1874_v9 }
0x1bc3   :  { %v2660_v12 = vpop.eup %2659 }
0x1c28   :  { %v1894_v13 = vpop.permute.xlu1 %1893 }
0x1c29   :  { %v1896_v40 = vmul.f32 %v2660_v12, %v1894_v13  ;;  %v1490_v13 = vadd.f32 %v3336_v52, %v3356_v10 }
0x1c2b   :  { %v1897_v41 = vadd.f32 %v1896_v40, %v1817_v31  ;;  %v1900_v14 = vpack.c.bf16 %v1896_v40, %v1896_v40 }
0x1c2d   :  { %2408 = vmatmul.mubr.msk.bf16.vlgmr.msra.gmra.mrb[52].mxu0 %vm478_vm1, %v1900_v14 }
0x1c2e   :  { %2065 = vmatpush1.bf16.msra.mxu0 %v3285_v11  ;;  %2096 = vmatprep.mubr.bf16.mxu0 %v2809_v0 }
0x1c2f   :  { %2066 = vmatprep.subr.bf16.mxu0 %v3287_v15 }
0x1c32   :  { %2067 = vmatpush1.bf16.msra.mxu0 %v3292_v46 }
0x1c33   :  { %2068 = vmatprep.subr.bf16.mxu0 %v3300_v16 }
0x1c36   :  { %2069 = vmatpush1.bf16.msra.mxu0 %v3302_v61 }
0x1c37   :  { %2070 = vmatprep.subr.bf16.mxu0 %v3308_v63 }
0x1c3a   :  { %2071 = vmatpush1.bf16.msra.mxu0 %v3310_v32 }
0x1d00   :  { %v1938_v48 = vpop.f32.mrb[52].mxu0 }
0x1d01   :  { %v1945_v42 = vadd.f32 %v1938_v48, %v1530_v44  ;;  %v1940_v35 = vpop.f32.mrb[53].mxu0 }
0x1d02   :  { %v1946_v49 = vadd.f32 %v1940_v35, %v1531_v7  ;;  %v1942_v19 = vpop.f32.mrb[54].mxu0 }
0x1d03   :  { %v1943_v36 = vpop.f32.mrb[55].mxu0  ;;  %v2409_v50 = vmul.f32 -1.442695, %v1945_v42 }
0x1d04   :  { %2661 = vtanh.f32 %v1946_v49  ;;  %v2410_v31 = vmul.f32 -1.442695, %v1946_v49 }
0x1d05   :  { %2663 = vpow2.f32 %v2409_v50 }
0x1d0e   :  { %v2662_v28 = vpop.eup %2661 }
0x1d0f   :  { %1962 = vrot.lane.b32.xlu0 %v2662_v28, %s2810_s0  ;;  %v2664_v51 = vpop.eup %2663 }
0x1d10   :  { %v1953_v26 = vadd.f32 1.0, %v2664_v51 }
0x1d12   :  { %2665 = vrcp.f32 %v1953_v26 }
0x1d1c   :  { %v2666_v53 = vpop.eup %2665 }
0x1d1d   :  { %v1960_v2 = vmul.f32 %v2666_v53, %v1890_v39 }
0x1d81   :  { %v1963_v1 = vpop.permute.xlu0 %1962 }
0x1d82   :  { %v1965_v55 = vmul.f32 %v2666_v53, %v1963_v1 }
0x1d84   :  { %1967 = vrot.lane.b32.xlu1 %v1965_v55, %s2810_s0 }
0x1df6   :  { %v1968_v43 = vpop.permute.xlu1 %1967 }
0x1df7   :  { %v1970_v45 = vadd.f32 %v1968_v43, %v1960_v2 }
0x1df9   :  { %2667 = vtanh.f32 %v1970_v45 }
0x1dfa   :  { %2669 = vpow2.f32 %v2410_v31 }
0x1e03   :  { %v2668_v33 = vpop.eup %2667 }
0x1e04   :  { %1973 = vrot.lane.b32.xlu0 %v2668_v33, %s2810_s0  ;;  %v2670_v6 = vpop.eup %2669 }
0x1e05   :  { %v1954_v23 = vadd.f32 1.0, %v2670_v6 }
0x1e07   :  { %2671 = vrcp.f32 %v1954_v23  ;;  %v1470_v23 = vadd.f32 %v3347_v59, %v3356_v10 }
0x1e11   :  { %v2672_v56 = vpop.eup %2671 }
0x1e76   :  { %v1974_v22 = vpop.permute.xlu0 %1973 }
0x1e77   :  { %v1976_v24 = vmul.f32 %v2672_v56, %v1974_v22  ;;  %v1471_v22 = vadd.f32 %v3351_v3, %v3360_v34  ;;  %v2513_v3 = vld [vmem:[%s3494_s9] sm:$0xff]  }
0x1e79   :  { %v1977_v54 = vadd.f32 %v1976_v24, %v1897_v41  ;;  %v1980_v25 = vpack.c.bf16 %v1976_v24, %v1976_v24  ;;  %v1491_v41 = vadd.f32 %v3340_v20, %v3360_v34 }
0x1e7b   :  { %2411 = vmatmul.mubr.msk.bf16.vlgmr.msra.gmra.mrb[60].mxu1 %vm478_vm1, %v1980_v25 }
0x1e7c   :  { %2145 = vmatpush1.bf16.msra.mxu1 %v3285_v11  ;;  %2176 = vmatprep.mubr.bf16.mxu1 %v2809_v0  ;;  %v1511_v11 = vadd.f32 %v3262_v58, %v3360_v34  ;;  %v2811_v34 = vmov 0.0  }
0x1e7d   :  { %2146 = vmatprep.subr.bf16.mxu1 %v3287_v15  ;;  %2431 = vmatprep.subr.bf16.mxu0 %v2811_v34 }
0x1e80   :  { %2147 = vmatpush1.bf16.msra.mxu1 %v3292_v46 }
0x1e81   :  { %2148 = vmatprep.subr.bf16.mxu1 %v3300_v16 }
0x1e84   :  { %2149 = vmatpush1.bf16.msra.mxu1 %v3302_v61 }
0x1e85   :  { %2150 = vmatprep.subr.bf16.mxu1 %v3308_v63 }
0x1e88   :  { %2151 = vmatpush1.bf16.msra.mxu1 %v3310_v32 }
0x1f4e   :  { %v2018_v37 = vpop.f32.mrb[60].mxu1 }
0x1f4f   :  { %v2025_v0 = vadd.f32 %v2018_v37, %v1510_v62  ;;  %v2020_v8 = vpop.f32.mrb[61].mxu1 }
0x1f50   :  { %v2026_v15 = vadd.f32 %v2020_v8, %v1511_v11  ;;  %v2022_v21 = vpop.f32.mrb[62].mxu1 }
0x1f51   :  { %v2023_v46 = vpop.f32.mrb[63].mxu1  ;;  %v2412_v61 = vmul.f32 -1.442695, %v2025_v0 }
0x1f52   :  { %2673 = vtanh.f32 %v2026_v15  ;;  %v2413_v4 = vmul.f32 -1.442695, %v2026_v15  ;;  %v2514_v46 = vld [vmem:[%s3494_s9 + $0x8] sm:$0xff]  }
0x1f53   :  { %2675 = vpow2.f32 %v2412_v61 }
0x1f5c   :  { %v2674_v16 = vpop.eup %2673 }
0x1f5d   :  { %2042 = vrot.lane.b32.xlu1 %v2674_v16, %s2810_s0  ;;  %v2676_v63 = vpop.eup %2675 }
0x1f5e   :  { %v2033_v32 = vadd.f32 1.0, %v2676_v63 }
0x1f60   :  { %2677 = vrcp.f32 %v2033_v32  ;;  %v2515_v32 = vld [vmem:[%s3494_s9 + $0x10] sm:$0xff]  }
0x1f6a   :  { %v2678_v30 = vpop.eup %2677 }
0x1f6b   :  { %v2040_v58 = vmul.f32 %v2678_v30, %v1970_v45 }
0x1fcf   :  { %v2043_v57 = vpop.permute.xlu1 %2042 }
0x1fd0   :  { %v2045_v47 = vmul.f32 %v2678_v30, %v2043_v57  ;;  %v2516_v30 = vld [vmem:[%s3494_s9 + $0x18] sm:$0xff]  }
0x1fd2   :  { %2047 = vrot.lane.b32.xlu0 %v2045_v47, %s2810_s0 }
0x2044   :  { %v2048_v38 = vpop.permute.xlu0 %2047 }
0x2045   :  { %v2050_v60 = vadd.f32 %v2048_v38, %v2040_v58 }
0x2047   :  { %2679 = vtanh.f32 %v2050_v60 }
0x2048   :  { %2681 = vpow2.f32 %v2413_v4 }
0x2051   :  { %v2680_v5 = vpop.eup %2679 }
0x2052   :  { %2053 = vrot.lane.b32.xlu1 %v2680_v5, %s2810_s0  ;;  %v2682_v27 = vpop.eup %2681 }
0x2053   :  { %v2034_v39 = vadd.f32 1.0, %v2682_v27 }
0x2055   :  { %2683 = vrcp.f32 %v2034_v39 }
0x205f   :  { %v2684_v18 = vpop.eup %2683 }
0x20c4   :  { %v2054_v29 = vpop.permute.xlu1 %2053 }
0x20c5   :  { %v2056_v17 = vmul.f32 %v2684_v18, %v2054_v29  ;;  %v2420_v29 = vld [vmem:[#allocation10] ss:$0 sm:$0xff] }
0x20c7   :  { %v2057_v9 = vadd.f32 %v2056_v17, %v1977_v54  ;;  %v2060_v12 = vpack.c.bf16 %v2056_v17, %v2056_v17 }
0x20c9   :  { %2414 = vmatmul.mubr.msk.bf16.vlgmr.msra.gmra.mrb[56].mxu0 %vm478_vm1, %v2060_v12 }
0x20ca   :  { %2432 = vmatpush3.bf16.msra.mxu0 %v2513_v3  ;;  %2439 = vmatprep.mubr.msk.bf16.mxu0 %vm2812_vm2, %v2811_v34 }
0x20cb   :  { %2433 = vmatprep.subr.bf16.mxu0 %v2811_v34 }
0x20ce   :  { %2434 = vmatpush3.bf16.msra.mxu0 %v2514_v46 }
0x20cf   :  { %2435 = vmatprep.subr.bf16.mxu0 %v2811_v34 }
0x20d2   :  { %2436 = vmatpush3.bf16.msra.mxu0 %v2515_v32 }
0x20d3   :  { %2437 = vmatprep.subr.bf16.mxu0 %v2811_v34 }
0x20d6   :  { %2438 = vmatpush3.bf16.msra.mxu0 %v2516_v30 }
0x219c   :  { %v2098_v40 = vpop.f32.mrb[56].mxu0 }
0x219d   :  { %v2105_v14 = vadd.f32 %v2098_v40, %v1490_v13  ;;  %v2100_v44 = vpop.f32.mrb[57].mxu0 }
0x219e   :  { %v2106_v48 = vadd.f32 %v2100_v44, %v1491_v41  ;;  %v2102_v7 = vpop.f32.mrb[58].mxu0 }
0x219f   :  { %v2103_v42 = vpop.f32.mrb[59].mxu0  ;;  %v2415_v49 = vmul.f32 -1.442695, %v2105_v14 }
0x21a0   :  { %2685 = vtanh.f32 %v2106_v48  ;;  %v2416_v1 = vmul.f32 -1.442695, %v2106_v48 }
0x21a1   :  { %2687 = vpow2.f32 %v2415_v49 }
0x21aa   :  { %v2686_v35 = vpop.eup %2685 }
0x21ab   :  { %2122 = vrot.lane.b32.xlu0 %v2686_v35, %s2810_s0  ;;  %v2688_v19 = vpop.eup %2687 }
0x21ac   :  { %v2113_v36 = vadd.f32 1.0, %v2688_v19 }
0x21ae   :  { %2689 = vrcp.f32 %v2113_v36 }
0x21b8   :  { %v2690_v28 = vpop.eup %2689 }
0x21b9   :  { %v2120_v20 = vmul.f32 %v2690_v28, %v2050_v60 }
0x221d   :  { %v2123_v52 = vpop.permute.xlu0 %2122 }
0x221e   :  { %v2125_v50 = vmul.f32 %v2690_v28, %v2123_v52 }
0x2220   :  { %2127 = vrot.lane.b32.xlu1 %v2125_v50, %s2810_s0 }
0x2292   :  { %v2128_v51 = vpop.permute.xlu1 %2127 }
0x2293   :  { %v2130_v26 = vadd.f32 %v2128_v51, %v2120_v20 }
0x2295   :  { %2691 = vtanh.f32 %v2130_v26 }
0x2296   :  { %2693 = vpow2.f32 %v2416_v1 }
0x229f   :  { %v2692_v53 = vpop.eup %2691 }
0x22a0   :  { %2133 = vrot.lane.b32.xlu0 %v2692_v53, %s2810_s0  ;;  %v2694_v55 = vpop.eup %2693 }
0x22a1   :  { %v2114_v2 = vadd.f32 1.0, %v2694_v55 }
0x22a3   :  { %2695 = vrcp.f32 %v2114_v2 }
0x22ad   :  { %v2696_v43 = vpop.eup %2695 }
0x2312   :  { %v2134_v45 = vpop.permute.xlu0 %2133 }
0x2313   :  { %v2136_v33 = vmul.f32 %v2696_v43, %v2134_v45 }
0x2315   :  { %v2137_v31 = vadd.f32 %v2136_v33, %v2057_v9  ;;  %v2140_v6 = vpack.c.bf16 %v2136_v33, %v2136_v33 }
0x2317   :  { %2417 = vmatmul.mubr.msk.bf16.vlgmr.msra.gmra.mrb[64].mxu1 %vm478_vm1, %v2140_v6 }
0x23ea   :  { %v2178_v56 = vpop.f32.mrb[64].mxu1 }
0x23eb   :  { %v2185_v24 = vadd.f32 %v2178_v56, %v1470_v23  ;;  %v2180_v54 = vpop.f32.mrb[65].mxu1 }
0x23ec   :  { %v2186_v25 = vadd.f32 %v2180_v54, %v1471_v22  ;;  %v2182_v62 = vpop.f32.mrb[66].mxu1 }
0x23ed   :  { %v2183_v37 = vpop.f32.mrb[67].mxu1  ;;  %v2418_v0 = vmul.f32 -1.442695, %v2185_v24 }
0x23ee   :  { %2697 = vtanh.f32 %v2186_v25  ;;  %v2419_v47 = vmul.f32 -1.442695, %v2186_v25 }
0x23ef   :  { %2699 = vpow2.f32 %v2418_v0 }
0x23f8   :  { %v2698_v11 = vpop.eup %2697 }
0x23f9   :  { %2202 = vrot.lane.b32.xlu1 %v2698_v11, %s2810_s0  ;;  %v2700_v8 = vpop.eup %2699 }
0x23fa   :  { %v2193_v15 = vadd.f32 1.0, %v2700_v8 }
0x23fc   :  { %2701 = vrcp.f32 %v2193_v15 }
0x2406   :  { %v2702_v21 = vpop.eup %2701 }
0x2407   :  { %v2200_v16 = vmul.f32 %v2702_v21, %v2130_v26 }
0x246b   :  { %v2203_v59 = vpop.permute.xlu1 %2202 }
0x246c   :  { %v2205_v10 = vmul.f32 %v2702_v21, %v2203_v59 }
0x246e   :  { %2207 = vrot.lane.b32.xlu0 %v2205_v10, %s2810_s0 }
0x24e0   :  { %v2208_v61 = vpop.permute.xlu0 %2207 }
0x24e1   :  { %v2210_v63 = vadd.f32 %v2208_v61, %v2200_v16 }
0x24e3   :  { %2703 = vtanh.f32 %v2210_v63 }
0x24e4   :  { %2705 = vpow2.f32 %v2419_v47 }
0x24ed   :  { %v2704_v57 = vpop.eup %2703 }
0x24ee   :  { %2213 = vrot.lane.b32.xlu1 %v2704_v57, %s2810_s0  ;;  %v2706_v58 = vpop.eup %2705 }
0x24ef   :  { %v2194_v38 = vadd.f32 1.0, %v2706_v58 }
0x24f1   :  { %2707 = vrcp.f32 %v2194_v38 }
0x24fb   :  { %v2708_v60 = vpop.eup %2707 }
0x2560   :  { %v2214_v5 = vpop.permute.xlu1 %2213 }
0x2561   :  { %v2216_v4 = vmul.f32 %v2708_v60, %v2214_v5 }
0x2563   :  { %v2217_v27 = vadd.f32 %v2216_v4, %v2137_v31 }
0x2565   :  { %v2218_v39 = vmul.f32 0.125, %v2217_v27 }
0x2567   :  { %v2219_v18 = vpack.c.bf16 %v2218_v39, %v2218_v39 }
0x2569   :  { %2440 = vmatmul.mubr.msk.bf16.vlgmr.msra.gmra.mrb[60].mxu0 %vm478_vm1, %v2219_v18 }
0x263c   :  { %v2296_v17 = vpop.f32.mrb[60].mxu0 }
0x263d   :  { %v2297_v9 = vadd.f32 %v2420_v29, %v2296_v17  ;;  %v2441_v12 = vpop.f32.mrb[61].mxu0 }
0x263e   :  { %v2299_v13 = vpop.f32.mrb[62].mxu0 }
0x263f   :  { %2303 = vst.msk [vmem:[%s3496_s11] sm:$0xff] %vm2302_vm3, %v2297_v9  ;;  %v2442_v40 = vpop.f32.mrb[63].mxu0 }
0x2640   :  { %2308 = vsyncpa [#allocation6], 1 }
0x2641   :  { %2309 = vsyncpa [#allocation8], 1 }
0x2642   :  { %2310 = vsyncpa [#allocation11], 1 }

</bundles_post_ra>
